<compile_context>
chip_gen: v7x
topology: tpu7x:2x2x1
jax: 0.10.0
libtpu: 0.0.40
codegen_flags: <defaults>
</compile_context>

<pallas_src>
import jax
import jax.numpy as jnp
import numpy as np
from jax.experimental import pallas as pl
from jax.experimental.pallas import tpu as pltpu

# ---------------- config (small, ViT-like) ----------------
B, C, IMG, P = 2, 3, 16, 8          # batch, channels, image size, patch size
GRID = IMG // P
N = GRID * GRID                     # 4 patches
S = N + 1                           # 5 tokens (cls + patches)
D = 32                              # transformer width
H = 4                               # attention heads
DH = D // H                         # head dim
MLP = 4 * D                         # mlp hidden (=128, lane-dense)
OUT = 16                            # output (embed) dim
OUT_PAD = 128                       # lane-dense padded output width
L = 2                               # transformer layers
CPP = C * P * P                     # flattened patch length (192)
EPS = 1e-5
PREC = jax.lax.Precision.HIGHEST    # reference only

# packed-slab layout constants
ATTN_COLS = 128                     # [wq|wk|wv|pad] columns of the QKV weight slab
W32_ROWS = CPP + L * D + L * MLP    # 192 + 64 + 256 = 512
WO_OFF = CPP                        # row offset of wo_l in the 32-lane slab
WPR_OFF = CPP + L * D               # row offset of wpr_l in the 32-lane slab
V32_ROWS = S + 4 + 6 * L            # cls+pos rows, ln_pre/post rows, per-layer rows


def _layernorm_ref(x, g, b):
    mu = jnp.mean(x, axis=-1, keepdims=True)
    var = jnp.mean((x - mu) ** 2, axis=-1, keepdims=True)
    return (x - mu) * jax.lax.rsqrt(var + EPS) * g + b


def _ln_fused(x, g, b):
    # independent sum(x) / sum(x^2) reductions (shorter XLU chain than two-pass LN)
    mu = jnp.mean(x, axis=-1, keepdims=True)
    ex2 = jnp.mean(x * x, axis=-1, keepdims=True)
    var = ex2 - mu * mu
    return (x - mu) * jax.lax.rsqrt(var + EPS) * g + b


# ---------------- the Pallas kernel (one grid step == one image) ----------------
def encoder_kernel(patches_ref, w128_ref, w32_ref, v32_ref, b128_ref, out_ref):
    bf16, f32 = jnp.bfloat16, jnp.float32

    # ---- patch embedding: the stride=P conv as one [S,CPP] x [CPP,D] GEMM
    #      (row 0 of patches is zero => row 0 of pe is zero => cls slot)
    wpatch = w32_ref[0:CPP, :]                                     # [CPP, D] bf16
    pe = jnp.dot(patches_ref[0], wpatch, preferred_element_type=f32)   # [S, D] f32

    # ---- add (cls folded into row 0 of) positional embedding
    x = pe + v32_ref[0:S, :]                                       # [S, D] f32

    # ---- ln_pre
    x = _ln_fused(x, v32_ref[S:S + 1, :], v32_ref[S + 1:S + 2, :])

    for l in range(L):                       # static unrolled layer loop
        base = S + 4 + 6 * l                 # per-layer row base in the 32-lane vector slab
        w_attn = w128_ref[2 * l]             # [D, 128] bf16: [wq*scale | wk | wv | pad]
        wfc = w128_ref[2 * l + 1]            # [D, MLP]  bf16
        wo = w32_ref[WO_OFF + l * D:WO_OFF + (l + 1) * D, :]           # [D, D]   bf16
        wpr = w32_ref[WPR_OFF + l * MLP:WPR_OFF + (l + 1) * MLP, :]    # [MLP, D] bf16

        # ---------- multi-head self-attention ----------
        xa = _ln_fused(x, v32_ref[base:base + 1, :], v32_ref[base + 1:base + 2, :])
        # full 128-lane QKV GEMM + full-width bias add (no weight / bias lane slicing)
        qkvw = jnp.dot(xa.astype(bf16), w_attn,
                       preferred_element_type=f32) + b128_ref[l, 0:1, :]   # [S, 128]

        def heads(off):                      # [S, D] lane chunk -> [H, S, DH] bf16
            return jnp.stack(
                [qkvw[:, off + h * DH:off + (h + 1) * DH] for h in range(H)],
                axis=0).astype(bf16)

        qh, kh, vh = heads(0), heads(D), heads(2 * D)                 # [H, S, DH]

        # head-batched score + PV matmuls (bf16 operands, f32 accumulation)
        s = jnp.einsum('hqd,hkd->hqk', qh, kh,
                       preferred_element_type=f32)                    # [H, S, S]
        s = s - jnp.max(s, axis=-1, keepdims=True)
        ps = jnp.exp(s)
        ps = ps * pl.reciprocal(jnp.sum(ps, axis=-1, keepdims=True), approx=True)
        oh = jnp.einsum('hqk,hkd->hqd', ps.astype(bf16), vh,
                        preferred_element_type=f32)                   # [H, S, DH]
        o = jnp.concatenate([oh[h] for h in range(H)], axis=-1)       # [S, D]

        x = x + jnp.dot(o.astype(bf16), wo,
                        preferred_element_type=f32) + v32_ref[base + 4:base + 5, :]

        # ---------- MLP (c_fc -> QuickGELU -> c_proj) ----------
        xm = _ln_fused(x, v32_ref[base + 2:base + 3, :], v32_ref[base + 3:base + 4, :])
        hdn = jnp.dot(xm.astype(bf16), wfc,
                      preferred_element_type=f32) + b128_ref[l, 1:2, :]
        hdn = hdn * jax.nn.sigmoid(1.702 * hdn)                       # QuickGELU (f32)
        x = x + jnp.dot(hdn.astype(bf16), wpr,
                        preferred_element_type=f32) + v32_ref[base + 5:base + 6, :]

    # ---- class token, ln_post, padded lane-dense projection
    cls_tok = _ln_fused(x[0:1, :], v32_ref[S + 2:S + 3, :], v32_ref[S + 3:S + 4, :])
    out_ref[0] = jnp.dot(cls_tok.astype(bf16), w128_ref[2 * L],
                         preferred_element_type=f32)                  # [1, OUT_PAD]


# ---------------- glue: patch extraction, param packing, wrapper ----------------
def extract_patches(images):
    # images: [B, C, H, W] -> [B, N, C*P*P] with (c, ky, kx) flattening order
    x = images.reshape(B, C, GRID, P, GRID, P)
    x = x.transpose(0, 2, 4, 1, 3, 5)          # [B, gy, gx, C, P, P]
    return x.reshape(B, N, CPP)


def init_params(key):
    ks = jax.random.split(key, 8 + L)

    def nrm(k, shape, s=0.02):
        return (s * jax.random.normal(k, shape)).astype(jnp.float32)

    p = {
        'conv_w': nrm(ks[0], (D, C, P, P)),
        'cls': nrm(ks[1], (D,)),
        'pos': nrm(ks[2], (S, D)),
        'lnpre_g': jnp.ones((D,), jnp.float32),
        'lnpre_b': jnp.zeros((D,), jnp.float32),
        'lnpost_g': jnp.ones((D,), jnp.float32),
        'lnpost_b': jnp.zeros((D,), jnp.float32),
        'proj': nrm(ks[3], (D, OUT)),
        'layers': [],
    }
    for l in range(L):
        lk = jax.random.split(ks[4 + l], 8)
        p['layers'].append(dict(
            ln1_g=jnp.ones((D,), jnp.float32), ln1_b=jnp.zeros((D,), jnp.float32),
            in_w=nrm(lk[0], (3 * D, D)), in_b=nrm(lk[1], (3 * D,)),
            out_w=nrm(lk[2], (D, D)), out_b=nrm(lk[3], (D,)),
            ln2_g=jnp.ones((D,), jnp.float32), ln2_b=jnp.zeros((D,), jnp.float32),
            fc_w=nrm(lk[4], (MLP, D)), fc_b=nrm(lk[5], (MLP,)),
            pr_w=nrm(lk[6], (D, MLP)), pr_b=nrm(lk[7], (D,)),
        ))
    return p


def pack_kernel_args(images, p):
    bf16 = jnp.bfloat16
    # patches padded with a zero row 0 (= cls slot) so the patch GEMM yields [S, D] directly
    patches = extract_patches(images)                                  # [B, N, CPP]
    patches = jnp.concatenate(
        [jnp.zeros((B, 1, CPP), patches.dtype), patches], axis=1)      # [B, S, CPP]

    scale = DH ** -0.5
    w128_slabs, b128_slabs = [], []
    wo_blocks, wpr_blocks = [], []
    v32_rows = [p['pos'].at[0].add(p['cls']),                          # [S, D] cls folded in
                jnp.stack([p['lnpre_g'], p['lnpre_b'],
                           p['lnpost_g'], p['lnpost_b']], axis=0)]     # [4, D]

    for lp in p['layers']:
        in_w, in_b = lp['in_w'], lp['in_b']                 # torch (out, in) layout
        wq = in_w[0:D].T * scale                            # scale folded into Wq
        wk = in_w[D:2 * D].T
        wv = in_w[2 * D:3 * D].T
        w128_slabs.append(jnp.concatenate(
            [wq, wk, wv, jnp.zeros((D, D), jnp.float32)], axis=1))     # [D, 128]
        w128_slabs.append(lp['fc_w'].T)                                # [D, MLP]
        wo_blocks.append(lp['out_w'].T)                                # [D, D]
        wpr_blocks.append(lp['pr_w'].T)                                # [MLP, D]
        b_attn = jnp.concatenate([in_b[0:D] * scale, in_b[D:2 * D],
                                  in_b[2 * D:3 * D],
                                  jnp.zeros((D,), jnp.float32)])       # [128] (tail unused)
        b128_slabs.append(jnp.stack([b_attn, lp['fc_b']], axis=0))     # [2, 128]
        v32_rows.append(jnp.stack([lp['ln1_g'], lp['ln1_b'],
                                   lp['ln2_g'], lp['ln2_b'],
                                   lp['out_b'], lp['pr_b']], axis=0))  # [6, D]

    proj_pad = jnp.zeros((D, OUT_PAD), jnp.float32).at[:, :OUT].set(p['proj'])
    w128_slabs.append(proj_pad)

    w32 = jnp.concatenate([p['conv_w'].reshape(D, CPP).T]              # [CPP, D]
                          + wo_blocks + wpr_blocks, axis=0)            # [512, D]
    v32 = jnp.concatenate(v32_rows, axis=0)                            # [V32_ROWS, D]

    return [
        patches.astype(bf16),                      # [B, S, CPP]     bf16
        jnp.stack(w128_slabs).astype(bf16),        # [2L+1, D, 128]  bf16
        w32.astype(bf16),                          # [512, D]        bf16
        v32,                                       # [V32_ROWS, D]   f32
        jnp.stack(b128_slabs),                     # [L, 2, 128]     f32
    ]


def image_encoder_forward(images, params):
    args = pack_kernel_args(images, params)
    out = pl.pallas_call(
        encoder_kernel,
        out_shape=jax.ShapeDtypeStruct((B, 1, OUT_PAD), jnp.float32),
        grid_spec=pltpu.PrefetchScalarGridSpec(
            num_scalar_prefetch=0,
            grid=(B,),
            in_specs=[
                pl.BlockSpec((1, S, CPP), lambda b: (b, 0, 0)),             # patches
                pl.BlockSpec((2 * L + 1, D, ATTN_COLS), lambda b: (0, 0, 0)),  # 128-lane weights
                pl.BlockSpec((W32_ROWS, D), lambda b: (0, 0)),              # 32-lane weights
                pl.BlockSpec((V32_ROWS, D), lambda b: (0, 0)),              # f32 vector slab
                pl.BlockSpec((L, 2, OUT_PAD), lambda b: (0, 0, 0)),         # f32 wide biases
            ],
            out_specs=pl.BlockSpec((1, 1, OUT_PAD), lambda b: (b, 0, 0)),
        ),
        compiler_params=pltpu.CompilerParams(
            dimension_semantics=("parallel",)),
    )(*args)
    return out[:, 0, :OUT]


# ---------------- pure-JAX reference (mirrors CLIP VisionTransformer) ----------------
def reference_forward(images, p):
    patches = extract_patches(images)
    xp = jnp.einsum('bnc,cd->bnd', patches, p['conv_w'].reshape(D, -1).T,
                    precision=PREC)
    clsb = jnp.broadcast_to(p['cls'], (B, 1, D))
    x = jnp.concatenate([clsb, xp], axis=1) + p['pos']
    x = _layernorm_ref(x, p['lnpre_g'], p['lnpre_b'])
    for lp in p['layers']:
        xa = _layernorm_ref(x, lp['ln1_g'], lp['ln1_b'])
        qkv = jnp.einsum('bsd,ed->bse', xa, lp['in_w'], precision=PREC) + lp['in_b']
        q, k, v = jnp.split(qkv, 3, axis=-1)
        heads = lambda t: t.reshape(B, S, H, DH).transpose(0, 2, 1, 3)
        q, k, v = heads(q) * (DH ** -0.5), heads(k), heads(v)
        a = jax.nn.softmax(jnp.einsum('bhqd,bhkd->bhqk', q, k, precision=PREC), -1)
        o = jnp.einsum('bhqk,bhkd->bhqd', a, v, precision=PREC)
        o = o.transpose(0, 2, 1, 3).reshape(B, S, D)
        x = x + jnp.einsum('bsd,ed->bse', o, lp['out_w'], precision=PREC) + lp['out_b']
        xm = _layernorm_ref(x, lp['ln2_g'], lp['ln2_b'])
        hdn = jnp.einsum('bsd,fd->bsf', xm, lp['fc_w'], precision=PREC) + lp['fc_b']
        hdn = hdn * jax.nn.sigmoid(1.702 * hdn)
        x = x + jnp.einsum('bsf,df->bsd', hdn, lp['pr_w'], precision=PREC) + lp['pr_b']
    ct = _layernorm_ref(x[:, 0, :], p['lnpost_g'], p['lnpost_b'])
    return jnp.dot(ct, p['proj'], precision=PREC)


if __name__ == "__main__":
    root = jax.random.PRNGKey(0)
    k_img, k_par = jax.random.split(root)
    images = jax.random.normal(k_img, (B, C, IMG, IMG), jnp.float32)   # NCHW like torch
    params = init_params(k_par)

    out = image_encoder_forward(images, params)
    out = jax.block_until_ready(out)
    assert out.shape == (B, OUT) and out.dtype == jnp.float32

    ref = reference_forward(images, params)
    # bf16 matmul operands everywhere (incl. score/PV) with f32 accumulation, plus
    # approx softmax reciprocal => slightly looser tolerance than the f32-HIGHEST reference.
    np.testing.assert_allclose(np.asarray(out), np.asarray(ref), rtol=3e-2, atol=5e-3)
    print("KERNEL_OK")
</pallas_src>

<mosaic_0001>
module attributes {stable_mosaic.version = 11 : i64} {
  func.func @encoder_kernel(%arg0: i32, %arg1: memref<1x5x192xbf16, #tpu.memory_space<vmem>>, %arg2: memref<5x32x128xbf16, #tpu.memory_space<vmem>>, %arg3: memref<512x32xbf16, #tpu.memory_space<vmem>>, %arg4: memref<21x32xf32, #tpu.memory_space<vmem>>, %arg5: memref<2x2x128xf32, #tpu.memory_space<vmem>>, %arg6: memref<1x1x128xf32, #tpu.memory_space<vmem>>) attributes {dimension_semantics = [#tpu.dimension_semantics<parallel>], iteration_bounds = array<i64: 2>, scalar_prefetch = 0 : i64, scratch_operands = 0 : i64, tpu.core_type = #tpu.core_type<tc>, window_params = [{transform_indices = @transform_0, window_bounds = array<i64: 1, 5, 192>}, {pipeline_mode = #tpu.pipeline_mode<synchronous>, transform_indices = @transform_1, window_bounds = array<i64: 5, 32, 128>}, {pipeline_mode = #tpu.pipeline_mode<synchronous>, transform_indices = @transform_2, window_bounds = array<i64: 512, 32>}, {pipeline_mode = #tpu.pipeline_mode<synchronous>, transform_indices = @transform_3, window_bounds = array<i64: 21, 32>}, {pipeline_mode = #tpu.pipeline_mode<synchronous>, transform_indices = @transform_4, window_bounds = array<i64: 2, 2, 128>}, {transform_indices = @transform_5, window_bounds = array<i64: 1, 1, 128>}]} {
    %c0 = arith.constant 0 : index
    %c0_0 = arith.constant 0 : index
    %0 = vector.load %arg3[%c0, %c0_0] : memref<512x32xbf16, #tpu.memory_space<vmem>>, vector<192x32xbf16>
    %c0_1 = arith.constant 0 : index
    %c0_2 = arith.constant 0 : index
    %c0_3 = arith.constant 0 : index
    %1 = vector.load %arg1[%c0_1, %c0_2, %c0_3] : memref<1x5x192xbf16, #tpu.memory_space<vmem>>, vector<1x5x192xbf16>
    %2 = vector.shape_cast %1 : vector<1x5x192xbf16> to vector<5x192xbf16>
    %cst = arith.constant dense<0.000000e+00> : vector<5x32xf32>
    %3 = tpu.matmul %2, %0, %cst {dimension_numbers = #tpu.dot_dimension_numbers<[1], [0], [0], [1], [0, 0, 1, 1], [], []>} : vector<5x192xbf16>, vector<192x32xbf16>, vector<5x32xf32> -> vector<5x32xf32>
    %c0_4 = arith.constant 0 : index
    %c0_5 = arith.constant 0 : index
    %4 = vector.load %arg4[%c0_4, %c0_5] : memref<21x32xf32, #tpu.memory_space<vmem>>, vector<5x32xf32>
    %5 = arith.addf %3, %4 : vector<5x32xf32>
    %c5 = arith.constant 5 : index
    %c0_6 = arith.constant 0 : index
    %6 = vector.load %arg4[%c5, %c0_6] : memref<21x32xf32, #tpu.memory_space<vmem>>, vector<1x32xf32>
    %c6 = arith.constant 6 : index
    %c0_7 = arith.constant 0 : index
    %7 = vector.load %arg4[%c6, %c0_7] : memref<21x32xf32, #tpu.memory_space<vmem>>, vector<1x32xf32>
    %cst_8 = arith.constant dense<0.000000e+00> : vector<5xf32>
    %8 = vector.multi_reduction <add>, %5, %cst_8 [1] : vector<5x32xf32> to vector<5xf32>
    %9 = vector.shape_cast %8 : vector<5xf32> to vector<5x1xf32>
    %cst_9 = arith.constant 3.200000e+01 : f32
    %10 = vector.broadcast %cst_9 : f32 to vector<5x1xf32>
    %11 = arith.divf %9, %10 : vector<5x1xf32>
    %12 = arith.mulf %5, %5 : vector<5x32xf32>
    %cst_10 = arith.constant dense<0.000000e+00> : vector<5xf32>
    %13 = vector.multi_reduction <add>, %12, %cst_10 [1] : vector<5x32xf32> to vector<5xf32>
    %14 = vector.shape_cast %13 : vector<5xf32> to vector<5x1xf32>
    %cst_11 = arith.constant 3.200000e+01 : f32
    %15 = vector.broadcast %cst_11 : f32 to vector<5x1xf32>
    %16 = arith.divf %14, %15 : vector<5x1xf32>
    %17 = arith.mulf %11, %11 : vector<5x1xf32>
    %18 = arith.subf %16, %17 : vector<5x1xf32>
    %19 = vector.broadcast %11 : vector<5x1xf32> to vector<5x32xf32>
    %20 = arith.subf %5, %19 : vector<5x32xf32>
    %cst_12 = arith.constant 9.99999974E-6 : f32
    %21 = vector.broadcast %cst_12 : f32 to vector<5x1xf32>
    %22 = arith.addf %18, %21 : vector<5x1xf32>
    %23 = math.rsqrt %22 : vector<5x1xf32>
    %24 = vector.broadcast %23 : vector<5x1xf32> to vector<5x32xf32>
    %25 = arith.mulf %20, %24 : vector<5x32xf32>
    %26 = vector.broadcast %6 : vector<1x32xf32> to vector<5x32xf32>
    %27 = arith.mulf %25, %26 : vector<5x32xf32>
    %28 = vector.broadcast %7 : vector<1x32xf32> to vector<5x32xf32>
    %29 = arith.addf %27, %28 : vector<5x32xf32>
    %c0_13 = arith.constant 0 : index
    %c0_14 = arith.constant 0 : index
    %c0_15 = arith.constant 0 : index
    %30 = vector.load %arg2[%c0_13, %c0_14, %c0_15] : memref<5x32x128xbf16, #tpu.memory_space<vmem>>, vector<1x32x128xbf16>
    %31 = vector.shape_cast %30 : vector<1x32x128xbf16> to vector<32x128xbf16>
    %c1 = arith.constant 1 : index
    %c0_16 = arith.constant 0 : index
    %c0_17 = arith.constant 0 : index
    %32 = vector.load %arg2[%c1, %c0_16, %c0_17] : memref<5x32x128xbf16, #tpu.memory_space<vmem>>, vector<1x32x128xbf16>
    %33 = vector.shape_cast %32 : vector<1x32x128xbf16> to vector<32x128xbf16>
    %c192 = arith.constant 192 : index
    %c0_18 = arith.constant 0 : index
    %34 = vector.load %arg3[%c192, %c0_18] : memref<512x32xbf16, #tpu.memory_space<vmem>>, vector<32x32xbf16>
    %c256 = arith.constant 256 : index
    %c0_19 = arith.constant 0 : index
    %35 = vector.load %arg3[%c256, %c0_19] : memref<512x32xbf16, #tpu.memory_space<vmem>>, vector<128x32xbf16>
    %c9 = arith.constant 9 : index
    %c0_20 = arith.constant 0 : index
    %36 = vector.load %arg4[%c9, %c0_20] : memref<21x32xf32, #tpu.memory_space<vmem>>, vector<1x32xf32>
    %c10 = arith.constant 10 : index
    %c0_21 = arith.constant 0 : index
    %37 = vector.load %arg4[%c10, %c0_21] : memref<21x32xf32, #tpu.memory_space<vmem>>, vector<1x32xf32>
    %cst_22 = arith.constant dense<0.000000e+00> : vector<5xf32>
    %38 = vector.multi_reduction <add>, %29, %cst_22 [1] : vector<5x32xf32> to vector<5xf32>
    %39 = vector.shape_cast %38 : vector<5xf32> to vector<5x1xf32>
    %cst_23 = arith.constant 3.200000e+01 : f32
    %40 = vector.broadcast %cst_23 : f32 to vector<5x1xf32>
    %41 = arith.divf %39, %40 : vector<5x1xf32>
    %42 = arith.mulf %29, %29 : vector<5x32xf32>
    %cst_24 = arith.constant dense<0.000000e+00> : vector<5xf32>
    %43 = vector.multi_reduction <add>, %42, %cst_24 [1] : vector<5x32xf32> to vector<5xf32>
    %44 = vector.shape_cast %43 : vector<5xf32> to vector<5x1xf32>
    %cst_25 = arith.constant 3.200000e+01 : f32
    %45 = vector.broadcast %cst_25 : f32 to vector<5x1xf32>
    %46 = arith.divf %44, %45 : vector<5x1xf32>
    %47 = arith.mulf %41, %41 : vector<5x1xf32>
    %48 = arith.subf %46, %47 : vector<5x1xf32>
    %49 = vector.broadcast %41 : vector<5x1xf32> to vector<5x32xf32>
    %50 = arith.subf %29, %49 : vector<5x32xf32>
    %cst_26 = arith.constant 9.99999974E-6 : f32
    %51 = vector.broadcast %cst_26 : f32 to vector<5x1xf32>
    %52 = arith.addf %48, %51 : vector<5x1xf32>
    %53 = math.rsqrt %52 : vector<5x1xf32>
    %54 = vector.broadcast %53 : vector<5x1xf32> to vector<5x32xf32>
    %55 = arith.mulf %50, %54 : vector<5x32xf32>
    %56 = vector.broadcast %36 : vector<1x32xf32> to vector<5x32xf32>
    %57 = arith.mulf %55, %56 : vector<5x32xf32>
    %58 = vector.broadcast %37 : vector<1x32xf32> to vector<5x32xf32>
    %59 = arith.addf %57, %58 : vector<5x32xf32>
    %60 = arith.truncf %59 : vector<5x32xf32> to vector<5x32xbf16>
    %cst_27 = arith.constant dense<0.000000e+00> : vector<5x128xf32>
    %61 = tpu.matmul %60, %31, %cst_27 {dimension_numbers = #tpu.dot_dimension_numbers<[1], [0], [0], [1], [0, 0, 1, 1], [], []>} : vector<5x32xbf16>, vector<32x128xbf16>, vector<5x128xf32> -> vector<5x128xf32>
    %c0_28 = arith.constant 0 : index
    %c0_29 = arith.constant 0 : index
    %c0_30 = arith.constant 0 : index
    %62 = vector.load %arg5[%c0_28, %c0_29, %c0_30] : memref<2x2x128xf32, #tpu.memory_space<vmem>>, vector<1x1x128xf32>
    %63 = vector.shape_cast %62 : vector<1x1x128xf32> to vector<1x128xf32>
    %64 = vector.broadcast %63 : vector<1x128xf32> to vector<5x128xf32>
    %65 = arith.addf %61, %64 : vector<5x128xf32>
    %66 = vector.extract_strided_slice %65 {offsets = [0, 0], sizes = [5, 8], strides = [1, 1]} : vector<5x128xf32> to vector<5x8xf32>
    %67 = vector.extract_strided_slice %65 {offsets = [0, 8], sizes = [5, 8], strides = [1, 1]} : vector<5x128xf32> to vector<5x8xf32>
    %68 = vector.extract_strided_slice %65 {offsets = [0, 16], sizes = [5, 8], strides = [1, 1]} : vector<5x128xf32> to vector<5x8xf32>
    %69 = vector.extract_strided_slice %65 {offsets = [0, 24], sizes = [5, 8], strides = [1, 1]} : vector<5x128xf32> to vector<5x8xf32>
    %70 = vector.shape_cast %66 : vector<5x8xf32> to vector<1x5x8xf32>
    %71 = vector.shape_cast %67 : vector<5x8xf32> to vector<1x5x8xf32>
    %72 = vector.shape_cast %68 : vector<5x8xf32> to vector<1x5x8xf32>
    %73 = vector.shape_cast %69 : vector<5x8xf32> to vector<1x5x8xf32>
    %74 = tpu.concatenate %70, %71, %72, %73 in 0 : vector<1x5x8xf32>, vector<1x5x8xf32>, vector<1x5x8xf32>, vector<1x5x8xf32> -> vector<4x5x8xf32>
    %75 = arith.truncf %74 : vector<4x5x8xf32> to vector<4x5x8xbf16>
    %76 = vector.extract_strided_slice %65 {offsets = [0, 32], sizes = [5, 8], strides = [1, 1]} : vector<5x128xf32> to vector<5x8xf32>
    %77 = vector.extract_strided_slice %65 {offsets = [0, 40], sizes = [5, 8], strides = [1, 1]} : vector<5x128xf32> to vector<5x8xf32>
    %78 = vector.extract_strided_slice %65 {offsets = [0, 48], sizes = [5, 8], strides = [1, 1]} : vector<5x128xf32> to vector<5x8xf32>
    %79 = vector.extract_strided_slice %65 {offsets = [0, 56], sizes = [5, 8], strides = [1, 1]} : vector<5x128xf32> to vector<5x8xf32>
    %80 = vector.shape_cast %76 : vector<5x8xf32> to vector<1x5x8xf32>
    %81 = vector.shape_cast %77 : vector<5x8xf32> to vector<1x5x8xf32>
    %82 = vector.shape_cast %78 : vector<5x8xf32> to vector<1x5x8xf32>
    %83 = vector.shape_cast %79 : vector<5x8xf32> to vector<1x5x8xf32>
    %84 = tpu.concatenate %80, %81, %82, %83 in 0 : vector<1x5x8xf32>, vector<1x5x8xf32>, vector<1x5x8xf32>, vector<1x5x8xf32> -> vector<4x5x8xf32>
    %85 = arith.truncf %84 : vector<4x5x8xf32> to vector<4x5x8xbf16>
    %86 = vector.extract_strided_slice %65 {offsets = [0, 64], sizes = [5, 8], strides = [1, 1]} : vector<5x128xf32> to vector<5x8xf32>
    %87 = vector.extract_strided_slice %65 {offsets = [0, 72], sizes = [5, 8], strides = [1, 1]} : vector<5x128xf32> to vector<5x8xf32>
    %88 = vector.extract_strided_slice %65 {offsets = [0, 80], sizes = [5, 8], strides = [1, 1]} : vector<5x128xf32> to vector<5x8xf32>
    %89 = vector.extract_strided_slice %65 {offsets = [0, 88], sizes = [5, 8], strides = [1, 1]} : vector<5x128xf32> to vector<5x8xf32>
    %90 = vector.shape_cast %86 : vector<5x8xf32> to vector<1x5x8xf32>
    %91 = vector.shape_cast %87 : vector<5x8xf32> to vector<1x5x8xf32>
    %92 = vector.shape_cast %88 : vector<5x8xf32> to vector<1x5x8xf32>
    %93 = vector.shape_cast %89 : vector<5x8xf32> to vector<1x5x8xf32>
    %94 = tpu.concatenate %90, %91, %92, %93 in 0 : vector<1x5x8xf32>, vector<1x5x8xf32>, vector<1x5x8xf32>, vector<1x5x8xf32> -> vector<4x5x8xf32>
    %95 = arith.truncf %94 : vector<4x5x8xf32> to vector<4x5x8xbf16>
    "tpu.trace_start"() <{level = 10 : i32, message = "hqd,hkd->hqk"}> : () -> ()
    %cst_31 = arith.constant dense<0.000000e+00> : vector<4x5x5xf32>
    %96 = tpu.matmul %75, %85, %cst_31 {dimension_numbers = #tpu.dot_dimension_numbers<[2], [2], [1], [1], [0, 0, 0, 1, 1, 1], [0], [0]>} : vector<4x5x8xbf16>, vector<4x5x8xbf16>, vector<4x5x5xf32> -> vector<4x5x5xf32>
    "tpu.trace_stop"() : () -> ()
    %cst_32 = arith.constant dense<0xFF800000> : vector<4x5xf32>
    %97 = vector.multi_reduction <maximumf>, %96, %cst_32 [2] : vector<4x5x5xf32> to vector<4x5xf32>
    %98 = vector.shape_cast %97 : vector<4x5xf32> to vector<4x5x1xf32>
    %99 = vector.broadcast %98 : vector<4x5x1xf32> to vector<4x5x5xf32>
    %100 = arith.subf %96, %99 : vector<4x5x5xf32>
    %101 = math.exp %100 : vector<4x5x5xf32>
    %cst_33 = arith.constant dense<0.000000e+00> : vector<4x5xf32>
    %102 = vector.multi_reduction <add>, %101, %cst_33 [2] : vector<4x5x5xf32> to vector<4x5xf32>
    %103 = vector.shape_cast %102 : vector<4x5xf32> to vector<4x5x1xf32>
    %104 = tpu.reciprocal %103 {approx = true} : vector<4x5x1xf32> -> vector<4x5x1xf32>
    %105 = vector.broadcast %104 : vector<4x5x1xf32> to vector<4x5x5xf32>
    %106 = arith.mulf %101, %105 : vector<4x5x5xf32>
    %107 = arith.truncf %106 : vector<4x5x5xf32> to vector<4x5x5xbf16>
    "tpu.trace_start"() <{level = 10 : i32, message = "hqk,hkd->hqd"}> : () -> ()
    %cst_34 = arith.constant dense<0.000000e+00> : vector<4x5x8xf32>
    %108 = tpu.matmul %107, %95, %cst_34 {dimension_numbers = #tpu.dot_dimension_numbers<[2], [1], [1], [2], [0, 0, 0, 1, 1, 2], [0], [0]>} : vector<4x5x5xbf16>, vector<4x5x8xbf16>, vector<4x5x8xf32> -> vector<4x5x8xf32>
    "tpu.trace_stop"() : () -> ()
    %109 = vector.extract_strided_slice %108 {offsets = [0, 0, 0], sizes = [1, 5, 8], strides = [1, 1, 1]} : vector<4x5x8xf32> to vector<1x5x8xf32>
    %110 = vector.shape_cast %109 : vector<1x5x8xf32> to vector<5x8xf32>
    %111 = vector.extract_strided_slice %108 {offsets = [1, 0, 0], sizes = [1, 5, 8], strides = [1, 1, 1]} : vector<4x5x8xf32> to vector<1x5x8xf32>
    %112 = vector.shape_cast %111 : vector<1x5x8xf32> to vector<5x8xf32>
    %113 = vector.extract_strided_slice %108 {offsets = [2, 0, 0], sizes = [1, 5, 8], strides = [1, 1, 1]} : vector<4x5x8xf32> to vector<1x5x8xf32>
    %114 = vector.shape_cast %113 : vector<1x5x8xf32> to vector<5x8xf32>
    %115 = vector.extract_strided_slice %108 {offsets = [3, 0, 0], sizes = [1, 5, 8], strides = [1, 1, 1]} : vector<4x5x8xf32> to vector<1x5x8xf32>
    %116 = vector.shape_cast %115 : vector<1x5x8xf32> to vector<5x8xf32>
    %117 = tpu.concatenate %110, %112, %114, %116 in 1 : vector<5x8xf32>, vector<5x8xf32>, vector<5x8xf32>, vector<5x8xf32> -> vector<5x32xf32>
    %118 = arith.truncf %117 : vector<5x32xf32> to vector<5x32xbf16>
    %cst_35 = arith.constant dense<0.000000e+00> : vector<5x32xf32>
    %119 = tpu.matmul %118, %34, %cst_35 {dimension_numbers = #tpu.dot_dimension_numbers<[1], [0], [0], [1], [0, 0, 1, 1], [], []>} : vector<5x32xbf16>, vector<32x32xbf16>, vector<5x32xf32> -> vector<5x32xf32>
    %120 = arith.addf %29, %119 : vector<5x32xf32>
    %c13 = arith.constant 13 : index
    %c0_36 = arith.constant 0 : index
    %121 = vector.load %arg4[%c13, %c0_36] : memref<21x32xf32, #tpu.memory_space<vmem>>, vector<1x32xf32>
    %122 = vector.broadcast %121 : vector<1x32xf32> to vector<5x32xf32>
    %123 = arith.addf %120, %122 : vector<5x32xf32>
    %c11 = arith.constant 11 : index
    %c0_37 = arith.constant 0 : index
    %124 = vector.load %arg4[%c11, %c0_37] : memref<21x32xf32, #tpu.memory_space<vmem>>, vector<1x32xf32>
    %c12 = arith.constant 12 : index
    %c0_38 = arith.constant 0 : index
    %125 = vector.load %arg4[%c12, %c0_38] : memref<21x32xf32, #tpu.memory_space<vmem>>, vector<1x32xf32>
    %cst_39 = arith.constant dense<0.000000e+00> : vector<5xf32>
    %126 = vector.multi_reduction <add>, %123, %cst_39 [1] : vector<5x32xf32> to vector<5xf32>
    %127 = vector.shape_cast %126 : vector<5xf32> to vector<5x1xf32>
    %cst_40 = arith.constant 3.200000e+01 : f32
    %128 = vector.broadcast %cst_40 : f32 to vector<5x1xf32>
    %129 = arith.divf %127, %128 : vector<5x1xf32>
    %130 = arith.mulf %123, %123 : vector<5x32xf32>
    %cst_41 = arith.constant dense<0.000000e+00> : vector<5xf32>
    %131 = vector.multi_reduction <add>, %130, %cst_41 [1] : vector<5x32xf32> to vector<5xf32>
    %132 = vector.shape_cast %131 : vector<5xf32> to vector<5x1xf32>
    %cst_42 = arith.constant 3.200000e+01 : f32
    %133 = vector.broadcast %cst_42 : f32 to vector<5x1xf32>
    %134 = arith.divf %132, %133 : vector<5x1xf32>
    %135 = arith.mulf %129, %129 : vector<5x1xf32>
    %136 = arith.subf %134, %135 : vector<5x1xf32>
    %137 = vector.broadcast %129 : vector<5x1xf32> to vector<5x32xf32>
    %138 = arith.subf %123, %137 : vector<5x32xf32>
    %cst_43 = arith.constant 9.99999974E-6 : f32
    %139 = vector.broadcast %cst_43 : f32 to vector<5x1xf32>
    %140 = arith.addf %136, %139 : vector<5x1xf32>
    %141 = math.rsqrt %140 : vector<5x1xf32>
    %142 = vector.broadcast %141 : vector<5x1xf32> to vector<5x32xf32>
    %143 = arith.mulf %138, %142 : vector<5x32xf32>
    %144 = vector.broadcast %124 : vector<1x32xf32> to vector<5x32xf32>
    %145 = arith.mulf %143, %144 : vector<5x32xf32>
    %146 = vector.broadcast %125 : vector<1x32xf32> to vector<5x32xf32>
    %147 = arith.addf %145, %146 : vector<5x32xf32>
    %148 = arith.truncf %147 : vector<5x32xf32> to vector<5x32xbf16>
    %cst_44 = arith.constant dense<0.000000e+00> : vector<5x128xf32>
    %149 = tpu.matmul %148, %33, %cst_44 {dimension_numbers = #tpu.dot_dimension_numbers<[1], [0], [0], [1], [0, 0, 1, 1], [], []>} : vector<5x32xbf16>, vector<32x128xbf16>, vector<5x128xf32> -> vector<5x128xf32>
    %c0_45 = arith.constant 0 : index
    %c1_46 = arith.constant 1 : index
    %c0_47 = arith.constant 0 : index
    %150 = vector.load %arg5[%c0_45, %c1_46, %c0_47] : memref<2x2x128xf32, #tpu.memory_space<vmem>>, vector<1x1x128xf32>
    %151 = vector.shape_cast %150 : vector<1x1x128xf32> to vector<1x128xf32>
    %152 = vector.broadcast %151 : vector<1x128xf32> to vector<5x128xf32>
    %153 = arith.addf %149, %152 : vector<5x128xf32>
    %cst_48 = arith.constant 1.702000e+00 : f32
    %154 = vector.broadcast %cst_48 : f32 to vector<5x128xf32>
    %155 = arith.mulf %154, %153 : vector<5x128xf32>
    %156 = arith.negf %155 : vector<5x128xf32>
    %157 = math.exp %156 : vector<5x128xf32>
    %cst_49 = arith.constant 1.000000e+00 : f32
    %158 = vector.broadcast %cst_49 : f32 to vector<5x128xf32>
    %159 = arith.addf %158, %157 : vector<5x128xf32>
    %160 = arith.divf %158, %159 : vector<5x128xf32>
    %161 = arith.mulf %153, %160 : vector<5x128xf32>
    %162 = arith.truncf %161 : vector<5x128xf32> to vector<5x128xbf16>
    %cst_50 = arith.constant dense<0.000000e+00> : vector<5x32xf32>
    %163 = tpu.matmul %162, %35, %cst_50 {dimension_numbers = #tpu.dot_dimension_numbers<[1], [0], [0], [1], [0, 0, 1, 1], [], []>} : vector<5x128xbf16>, vector<128x32xbf16>, vector<5x32xf32> -> vector<5x32xf32>
    %164 = arith.addf %123, %163 : vector<5x32xf32>
    %c14 = arith.constant 14 : index
    %c0_51 = arith.constant 0 : index
    %165 = vector.load %arg4[%c14, %c0_51] : memref<21x32xf32, #tpu.memory_space<vmem>>, vector<1x32xf32>
    %166 = vector.broadcast %165 : vector<1x32xf32> to vector<5x32xf32>
    %167 = arith.addf %164, %166 : vector<5x32xf32>
    %c2 = arith.constant 2 : index
    %c0_52 = arith.constant 0 : index
    %c0_53 = arith.constant 0 : index
    %168 = vector.load %arg2[%c2, %c0_52, %c0_53] : memref<5x32x128xbf16, #tpu.memory_space<vmem>>, vector<1x32x128xbf16>
    %169 = vector.shape_cast %168 : vector<1x32x128xbf16> to vector<32x128xbf16>
    %c3 = arith.constant 3 : index
    %c0_54 = arith.constant 0 : index
    %c0_55 = arith.constant 0 : index
    %170 = vector.load %arg2[%c3, %c0_54, %c0_55] : memref<5x32x128xbf16, #tpu.memory_space<vmem>>, vector<1x32x128xbf16>
    %171 = vector.shape_cast %170 : vector<1x32x128xbf16> to vector<32x128xbf16>
    %c224 = arith.constant 224 : index
    %c0_56 = arith.constant 0 : index
    %172 = vector.load %arg3[%c224, %c0_56] : memref<512x32xbf16, #tpu.memory_space<vmem>>, vector<32x32xbf16>
    %c384 = arith.constant 384 : index
    %c0_57 = arith.constant 0 : index
    %173 = vector.load %arg3[%c384, %c0_57] : memref<512x32xbf16, #tpu.memory_space<vmem>>, vector<128x32xbf16>
    %c15 = arith.constant 15 : index
    %c0_58 = arith.constant 0 : index
    %174 = vector.load %arg4[%c15, %c0_58] : memref<21x32xf32, #tpu.memory_space<vmem>>, vector<1x32xf32>
    %c16 = arith.constant 16 : index
    %c0_59 = arith.constant 0 : index
    %175 = vector.load %arg4[%c16, %c0_59] : memref<21x32xf32, #tpu.memory_space<vmem>>, vector<1x32xf32>
    %cst_60 = arith.constant dense<0.000000e+00> : vector<5xf32>
    %176 = vector.multi_reduction <add>, %167, %cst_60 [1] : vector<5x32xf32> to vector<5xf32>
    %177 = vector.shape_cast %176 : vector<5xf32> to vector<5x1xf32>
    %cst_61 = arith.constant 3.200000e+01 : f32
    %178 = vector.broadcast %cst_61 : f32 to vector<5x1xf32>
    %179 = arith.divf %177, %178 : vector<5x1xf32>
    %180 = arith.mulf %167, %167 : vector<5x32xf32>
    %cst_62 = arith.constant dense<0.000000e+00> : vector<5xf32>
    %181 = vector.multi_reduction <add>, %180, %cst_62 [1] : vector<5x32xf32> to vector<5xf32>
    %182 = vector.shape_cast %181 : vector<5xf32> to vector<5x1xf32>
    %cst_63 = arith.constant 3.200000e+01 : f32
    %183 = vector.broadcast %cst_63 : f32 to vector<5x1xf32>
    %184 = arith.divf %182, %183 : vector<5x1xf32>
    %185 = arith.mulf %179, %179 : vector<5x1xf32>
    %186 = arith.subf %184, %185 : vector<5x1xf32>
    %187 = vector.broadcast %179 : vector<5x1xf32> to vector<5x32xf32>
    %188 = arith.subf %167, %187 : vector<5x32xf32>
    %cst_64 = arith.constant 9.99999974E-6 : f32
    %189 = vector.broadcast %cst_64 : f32 to vector<5x1xf32>
    %190 = arith.addf %186, %189 : vector<5x1xf32>
    %191 = math.rsqrt %190 : vector<5x1xf32>
    %192 = vector.broadcast %191 : vector<5x1xf32> to vector<5x32xf32>
    %193 = arith.mulf %188, %192 : vector<5x32xf32>
    %194 = vector.broadcast %174 : vector<1x32xf32> to vector<5x32xf32>
    %195 = arith.mulf %193, %194 : vector<5x32xf32>
    %196 = vector.broadcast %175 : vector<1x32xf32> to vector<5x32xf32>
    %197 = arith.addf %195, %196 : vector<5x32xf32>
    %198 = arith.truncf %197 : vector<5x32xf32> to vector<5x32xbf16>
    %cst_65 = arith.constant dense<0.000000e+00> : vector<5x128xf32>
    %199 = tpu.matmul %198, %169, %cst_65 {dimension_numbers = #tpu.dot_dimension_numbers<[1], [0], [0], [1], [0, 0, 1, 1], [], []>} : vector<5x32xbf16>, vector<32x128xbf16>, vector<5x128xf32> -> vector<5x128xf32>
    %c1_66 = arith.constant 1 : index
    %c0_67 = arith.constant 0 : index
    %c0_68 = arith.constant 0 : index
    %200 = vector.load %arg5[%c1_66, %c0_67, %c0_68] : memref<2x2x128xf32, #tpu.memory_space<vmem>>, vector<1x1x128xf32>
    %201 = vector.shape_cast %200 : vector<1x1x128xf32> to vector<1x128xf32>
    %202 = vector.broadcast %201 : vector<1x128xf32> to vector<5x128xf32>
    %203 = arith.addf %199, %202 : vector<5x128xf32>
    %204 = vector.extract_strided_slice %203 {offsets = [0, 0], sizes = [5, 8], strides = [1, 1]} : vector<5x128xf32> to vector<5x8xf32>
    %205 = vector.extract_strided_slice %203 {offsets = [0, 8], sizes = [5, 8], strides = [1, 1]} : vector<5x128xf32> to vector<5x8xf32>
    %206 = vector.extract_strided_slice %203 {offsets = [0, 16], sizes = [5, 8], strides = [1, 1]} : vector<5x128xf32> to vector<5x8xf32>
    %207 = vector.extract_strided_slice %203 {offsets = [0, 24], sizes = [5, 8], strides = [1, 1]} : vector<5x128xf32> to vector<5x8xf32>
    %208 = vector.shape_cast %204 : vector<5x8xf32> to vector<1x5x8xf32>
    %209 = vector.shape_cast %205 : vector<5x8xf32> to vector<1x5x8xf32>
    %210 = vector.shape_cast %206 : vector<5x8xf32> to vector<1x5x8xf32>
    %211 = vector.shape_cast %207 : vector<5x8xf32> to vector<1x5x8xf32>
    %212 = tpu.concatenate %208, %209, %210, %211 in 0 : vector<1x5x8xf32>, vector<1x5x8xf32>, vector<1x5x8xf32>, vector<1x5x8xf32> -> vector<4x5x8xf32>
    %213 = arith.truncf %212 : vector<4x5x8xf32> to vector<4x5x8xbf16>
    %214 = vector.extract_strided_slice %203 {offsets = [0, 32], sizes = [5, 8], strides = [1, 1]} : vector<5x128xf32> to vector<5x8xf32>
    %215 = vector.extract_strided_slice %203 {offsets = [0, 40], sizes = [5, 8], strides = [1, 1]} : vector<5x128xf32> to vector<5x8xf32>
    %216 = vector.extract_strided_slice %203 {offsets = [0, 48], sizes = [5, 8], strides = [1, 1]} : vector<5x128xf32> to vector<5x8xf32>
    %217 = vector.extract_strided_slice %203 {offsets = [0, 56], sizes = [5, 8], strides = [1, 1]} : vector<5x128xf32> to vector<5x8xf32>
    %218 = vector.shape_cast %214 : vector<5x8xf32> to vector<1x5x8xf32>
    %219 = vector.shape_cast %215 : vector<5x8xf32> to vector<1x5x8xf32>
    %220 = vector.shape_cast %216 : vector<5x8xf32> to vector<1x5x8xf32>
    %221 = vector.shape_cast %217 : vector<5x8xf32> to vector<1x5x8xf32>
    %222 = tpu.concatenate %218, %219, %220, %221 in 0 : vector<1x5x8xf32>, vector<1x5x8xf32>, vector<1x5x8xf32>, vector<1x5x8xf32> -> vector<4x5x8xf32>
    %223 = arith.truncf %222 : vector<4x5x8xf32> to vector<4x5x8xbf16>
    %224 = vector.extract_strided_slice %203 {offsets = [0, 64], sizes = [5, 8], strides = [1, 1]} : vector<5x128xf32> to vector<5x8xf32>
    %225 = vector.extract_strided_slice %203 {offsets = [0, 72], sizes = [5, 8], strides = [1, 1]} : vector<5x128xf32> to vector<5x8xf32>
    %226 = vector.extract_strided_slice %203 {offsets = [0, 80], sizes = [5, 8], strides = [1, 1]} : vector<5x128xf32> to vector<5x8xf32>
    %227 = vector.extract_strided_slice %203 {offsets = [0, 88], sizes = [5, 8], strides = [1, 1]} : vector<5x128xf32> to vector<5x8xf32>
    %228 = vector.shape_cast %224 : vector<5x8xf32> to vector<1x5x8xf32>
    %229 = vector.shape_cast %225 : vector<5x8xf32> to vector<1x5x8xf32>
    %230 = vector.shape_cast %226 : vector<5x8xf32> to vector<1x5x8xf32>
    %231 = vector.shape_cast %227 : vector<5x8xf32> to vector<1x5x8xf32>
    %232 = tpu.concatenate %228, %229, %230, %231 in 0 : vector<1x5x8xf32>, vector<1x5x8xf32>, vector<1x5x8xf32>, vector<1x5x8xf32> -> vector<4x5x8xf32>
    %233 = arith.truncf %232 : vector<4x5x8xf32> to vector<4x5x8xbf16>
    "tpu.trace_start"() <{level = 10 : i32, message = "hqd,hkd->hqk"}> : () -> ()
    %cst_69 = arith.constant dense<0.000000e+00> : vector<4x5x5xf32>
    %234 = tpu.matmul %213, %223, %cst_69 {dimension_numbers = #tpu.dot_dimension_numbers<[2], [2], [1], [1], [0, 0, 0, 1, 1, 1], [0], [0]>} : vector<4x5x8xbf16>, vector<4x5x8xbf16>, vector<4x5x5xf32> -> vector<4x5x5xf32>
    "tpu.trace_stop"() : () -> ()
    %cst_70 = arith.constant dense<0xFF800000> : vector<4x5xf32>
    %235 = vector.multi_reduction <maximumf>, %234, %cst_70 [2] : vector<4x5x5xf32> to vector<4x5xf32>
    %236 = vector.shape_cast %235 : vector<4x5xf32> to vector<4x5x1xf32>
    %237 = vector.broadcast %236 : vector<4x5x1xf32> to vector<4x5x5xf32>
    %238 = arith.subf %234, %237 : vector<4x5x5xf32>
    %239 = math.exp %238 : vector<4x5x5xf32>
    %cst_71 = arith.constant dense<0.000000e+00> : vector<4x5xf32>
    %240 = vector.multi_reduction <add>, %239, %cst_71 [2] : vector<4x5x5xf32> to vector<4x5xf32>
    %241 = vector.shape_cast %240 : vector<4x5xf32> to vector<4x5x1xf32>
    %242 = tpu.reciprocal %241 {approx = true} : vector<4x5x1xf32> -> vector<4x5x1xf32>
    %243 = vector.broadcast %242 : vector<4x5x1xf32> to vector<4x5x5xf32>
    %244 = arith.mulf %239, %243 : vector<4x5x5xf32>
    %245 = arith.truncf %244 : vector<4x5x5xf32> to vector<4x5x5xbf16>
    "tpu.trace_start"() <{level = 10 : i32, message = "hqk,hkd->hqd"}> : () -> ()
    %cst_72 = arith.constant dense<0.000000e+00> : vector<4x5x8xf32>
    %246 = tpu.matmul %245, %233, %cst_72 {dimension_numbers = #tpu.dot_dimension_numbers<[2], [1], [1], [2], [0, 0, 0, 1, 1, 2], [0], [0]>} : vector<4x5x5xbf16>, vector<4x5x8xbf16>, vector<4x5x8xf32> -> vector<4x5x8xf32>
    "tpu.trace_stop"() : () -> ()
    %247 = vector.extract_strided_slice %246 {offsets = [0, 0, 0], sizes = [1, 5, 8], strides = [1, 1, 1]} : vector<4x5x8xf32> to vector<1x5x8xf32>
    %248 = vector.shape_cast %247 : vector<1x5x8xf32> to vector<5x8xf32>
    %249 = vector.extract_strided_slice %246 {offsets = [1, 0, 0], sizes = [1, 5, 8], strides = [1, 1, 1]} : vector<4x5x8xf32> to vector<1x5x8xf32>
    %250 = vector.shape_cast %249 : vector<1x5x8xf32> to vector<5x8xf32>
    %251 = vector.extract_strided_slice %246 {offsets = [2, 0, 0], sizes = [1, 5, 8], strides = [1, 1, 1]} : vector<4x5x8xf32> to vector<1x5x8xf32>
    %252 = vector.shape_cast %251 : vector<1x5x8xf32> to vector<5x8xf32>
    %253 = vector.extract_strided_slice %246 {offsets = [3, 0, 0], sizes = [1, 5, 8], strides = [1, 1, 1]} : vector<4x5x8xf32> to vector<1x5x8xf32>
    %254 = vector.shape_cast %253 : vector<1x5x8xf32> to vector<5x8xf32>
    %255 = tpu.concatenate %248, %250, %252, %254 in 1 : vector<5x8xf32>, vector<5x8xf32>, vector<5x8xf32>, vector<5x8xf32> -> vector<5x32xf32>
    %256 = arith.truncf %255 : vector<5x32xf32> to vector<5x32xbf16>
    %cst_73 = arith.constant dense<0.000000e+00> : vector<5x32xf32>
    %257 = tpu.matmul %256, %172, %cst_73 {dimension_numbers = #tpu.dot_dimension_numbers<[1], [0], [0], [1], [0, 0, 1, 1], [], []>} : vector<5x32xbf16>, vector<32x32xbf16>, vector<5x32xf32> -> vector<5x32xf32>
    %258 = arith.addf %167, %257 : vector<5x32xf32>
    %c19 = arith.constant 19 : index
    %c0_74 = arith.constant 0 : index
    %259 = vector.load %arg4[%c19, %c0_74] : memref<21x32xf32, #tpu.memory_space<vmem>>, vector<1x32xf32>
    %260 = vector.broadcast %259 : vector<1x32xf32> to vector<5x32xf32>
    %261 = arith.addf %258, %260 : vector<5x32xf32>
    %c17 = arith.constant 17 : index
    %c0_75 = arith.constant 0 : index
    %262 = vector.load %arg4[%c17, %c0_75] : memref<21x32xf32, #tpu.memory_space<vmem>>, vector<1x32xf32>
    %c18 = arith.constant 18 : index
    %c0_76 = arith.constant 0 : index
    %263 = vector.load %arg4[%c18, %c0_76] : memref<21x32xf32, #tpu.memory_space<vmem>>, vector<1x32xf32>
    %cst_77 = arith.constant dense<0.000000e+00> : vector<5xf32>
    %264 = vector.multi_reduction <add>, %261, %cst_77 [1] : vector<5x32xf32> to vector<5xf32>
    %265 = vector.shape_cast %264 : vector<5xf32> to vector<5x1xf32>
    %cst_78 = arith.constant 3.200000e+01 : f32
    %266 = vector.broadcast %cst_78 : f32 to vector<5x1xf32>
    %267 = arith.divf %265, %266 : vector<5x1xf32>
    %268 = arith.mulf %261, %261 : vector<5x32xf32>
    %cst_79 = arith.constant dense<0.000000e+00> : vector<5xf32>
    %269 = vector.multi_reduction <add>, %268, %cst_79 [1] : vector<5x32xf32> to vector<5xf32>
    %270 = vector.shape_cast %269 : vector<5xf32> to vector<5x1xf32>
    %cst_80 = arith.constant 3.200000e+01 : f32
    %271 = vector.broadcast %cst_80 : f32 to vector<5x1xf32>
    %272 = arith.divf %270, %271 : vector<5x1xf32>
    %273 = arith.mulf %267, %267 : vector<5x1xf32>
    %274 = arith.subf %272, %273 : vector<5x1xf32>
    %275 = vector.broadcast %267 : vector<5x1xf32> to vector<5x32xf32>
    %276 = arith.subf %261, %275 : vector<5x32xf32>
    %cst_81 = arith.constant 9.99999974E-6 : f32
    %277 = vector.broadcast %cst_81 : f32 to vector<5x1xf32>
    %278 = arith.addf %274, %277 : vector<5x1xf32>
    %279 = math.rsqrt %278 : vector<5x1xf32>
    %280 = vector.broadcast %279 : vector<5x1xf32> to vector<5x32xf32>
    %281 = arith.mulf %276, %280 : vector<5x32xf32>
    %282 = vector.broadcast %262 : vector<1x32xf32> to vector<5x32xf32>
    %283 = arith.mulf %281, %282 : vector<5x32xf32>
    %284 = vector.broadcast %263 : vector<1x32xf32> to vector<5x32xf32>
    %285 = arith.addf %283, %284 : vector<5x32xf32>
    %286 = arith.truncf %285 : vector<5x32xf32> to vector<5x32xbf16>
    %cst_82 = arith.constant dense<0.000000e+00> : vector<5x128xf32>
    %287 = tpu.matmul %286, %171, %cst_82 {dimension_numbers = #tpu.dot_dimension_numbers<[1], [0], [0], [1], [0, 0, 1, 1], [], []>} : vector<5x32xbf16>, vector<32x128xbf16>, vector<5x128xf32> -> vector<5x128xf32>
    %c1_83 = arith.constant 1 : index
    %c1_84 = arith.constant 1 : index
    %c0_85 = arith.constant 0 : index
    %288 = vector.load %arg5[%c1_83, %c1_84, %c0_85] : memref<2x2x128xf32, #tpu.memory_space<vmem>>, vector<1x1x128xf32>
    %289 = vector.shape_cast %288 : vector<1x1x128xf32> to vector<1x128xf32>
    %290 = vector.broadcast %289 : vector<1x128xf32> to vector<5x128xf32>
    %291 = arith.addf %287, %290 : vector<5x128xf32>
    %cst_86 = arith.constant 1.702000e+00 : f32
    %292 = vector.broadcast %cst_86 : f32 to vector<5x128xf32>
    %293 = arith.mulf %292, %291 : vector<5x128xf32>
    %294 = arith.negf %293 : vector<5x128xf32>
    %295 = math.exp %294 : vector<5x128xf32>
    %cst_87 = arith.constant 1.000000e+00 : f32
    %296 = vector.broadcast %cst_87 : f32 to vector<5x128xf32>
    %297 = arith.addf %296, %295 : vector<5x128xf32>
    %298 = arith.divf %296, %297 : vector<5x128xf32>
    %299 = arith.mulf %291, %298 : vector<5x128xf32>
    %300 = arith.truncf %299 : vector<5x128xf32> to vector<5x128xbf16>
    %cst_88 = arith.constant dense<0.000000e+00> : vector<5x32xf32>
    %301 = tpu.matmul %300, %173, %cst_88 {dimension_numbers = #tpu.dot_dimension_numbers<[1], [0], [0], [1], [0, 0, 1, 1], [], []>} : vector<5x128xbf16>, vector<128x32xbf16>, vector<5x32xf32> -> vector<5x32xf32>
    %302 = arith.addf %261, %301 : vector<5x32xf32>
    %c20 = arith.constant 20 : index
    %c0_89 = arith.constant 0 : index
    %303 = vector.load %arg4[%c20, %c0_89] : memref<21x32xf32, #tpu.memory_space<vmem>>, vector<1x32xf32>
    %304 = vector.broadcast %303 : vector<1x32xf32> to vector<5x32xf32>
    %305 = arith.addf %302, %304 : vector<5x32xf32>
    %306 = vector.extract_strided_slice %305 {offsets = [0, 0], sizes = [1, 32], strides = [1, 1]} : vector<5x32xf32> to vector<1x32xf32>
    %c7 = arith.constant 7 : index
    %c0_90 = arith.constant 0 : index
    %307 = vector.load %arg4[%c7, %c0_90] : memref<21x32xf32, #tpu.memory_space<vmem>>, vector<1x32xf32>
    %c8 = arith.constant 8 : index
    %c0_91 = arith.constant 0 : index
    %308 = vector.load %arg4[%c8, %c0_91] : memref<21x32xf32, #tpu.memory_space<vmem>>, vector<1x32xf32>
    %cst_92 = arith.constant dense<0.000000e+00> : vector<1xf32>
    %309 = vector.multi_reduction <add>, %306, %cst_92 [1] : vector<1x32xf32> to vector<1xf32>
    %310 = vector.shape_cast %309 : vector<1xf32> to vector<1x1xf32>
    %cst_93 = arith.constant 3.200000e+01 : f32
    %311 = vector.broadcast %cst_93 : f32 to vector<1x1xf32>
    %312 = arith.divf %310, %311 : vector<1x1xf32>
    %313 = arith.mulf %306, %306 : vector<1x32xf32>
    %cst_94 = arith.constant dense<0.000000e+00> : vector<1xf32>
    %314 = vector.multi_reduction <add>, %313, %cst_94 [1] : vector<1x32xf32> to vector<1xf32>
    %315 = vector.shape_cast %314 : vector<1xf32> to vector<1x1xf32>
    %cst_95 = arith.constant 3.200000e+01 : f32
    %316 = vector.broadcast %cst_95 : f32 to vector<1x1xf32>
    %317 = arith.divf %315, %316 : vector<1x1xf32>
    %318 = arith.mulf %312, %312 : vector<1x1xf32>
    %319 = arith.subf %317, %318 : vector<1x1xf32>
    %320 = vector.broadcast %312 : vector<1x1xf32> to vector<1x32xf32>
    %321 = arith.subf %306, %320 : vector<1x32xf32>
    %cst_96 = arith.constant 9.99999974E-6 : f32
    %322 = vector.broadcast %cst_96 : f32 to vector<1x1xf32>
    %323 = arith.addf %319, %322 : vector<1x1xf32>
    %324 = math.rsqrt %323 : vector<1x1xf32>
    %325 = vector.broadcast %324 : vector<1x1xf32> to vector<1x32xf32>
    %326 = arith.mulf %321, %325 : vector<1x32xf32>
    %327 = arith.mulf %326, %307 : vector<1x32xf32>
    %328 = arith.addf %327, %308 : vector<1x32xf32>
    %329 = arith.truncf %328 : vector<1x32xf32> to vector<1x32xbf16>
    %c4 = arith.constant 4 : index
    %c0_97 = arith.constant 0 : index
    %c0_98 = arith.constant 0 : index
    %330 = vector.load %arg2[%c4, %c0_97, %c0_98] : memref<5x32x128xbf16, #tpu.memory_space<vmem>>, vector<1x32x128xbf16>
    %331 = vector.shape_cast %330 : vector<1x32x128xbf16> to vector<32x128xbf16>
    %cst_99 = arith.constant dense<0.000000e+00> : vector<1x128xf32>
    %332 = tpu.matmul %329, %331, %cst_99 {dimension_numbers = #tpu.dot_dimension_numbers<[1], [0], [0], [1], [0, 0, 1, 1], [], []>} : vector<1x32xbf16>, vector<32x128xbf16>, vector<1x128xf32> -> vector<1x128xf32>
    %c0_100 = arith.constant 0 : index
    %c0_101 = arith.constant 0 : index
    %c0_102 = arith.constant 0 : index
    %333 = vector.load %arg6[%c0_100, %c0_101, %c0_102] : memref<1x1x128xf32, #tpu.memory_space<vmem>>, vector<1x1x128xf32>
    %334 = vector.shape_cast %333 : vector<1x1x128xf32> to vector<1x128xf32>
    %335 = vector.shape_cast %332 : vector<1x128xf32> to vector<1x1x128xf32>
    tpu.vector_store %arg6[%c0_100, %c0_101, %c0_102], %335 {strides = array<i32>} : memref<1x1x128xf32, #tpu.memory_space<vmem>>, vector<1x1x128xf32>,
    return
  }
  func.func @transform_0(%arg0: i32) -> (i32, i32, i32) {
    %c0_i32 = arith.constant 0 : i32
    %c0_i32_0 = arith.constant 0 : i32
    %c0_i32_1 = arith.constant 0 : i32
    return %arg0, %c0_i32, %c0_i32_0 : i32, i32, i32
  }
  func.func @transform_1(%arg0: i32) -> (i32, i32, i32) {
    %c0_i32 = arith.constant 0 : i32
    %c0_i32_0 = arith.constant 0 : i32
    %c0_i32_1 = arith.constant 0 : i32
    %c0_i32_2 = arith.constant 0 : i32
    return %c0_i32, %c0_i32_0, %c0_i32_1 : i32, i32, i32
  }
  func.func @transform_2(%arg0: i32) -> (i32, i32) {
    %c0_i32 = arith.constant 0 : i32
    %c0_i32_0 = arith.constant 0 : i32
    %c0_i32_1 = arith.constant 0 : i32
    return %c0_i32, %c0_i32_0 : i32, i32
  }
  func.func @transform_3(%arg0: i32) -> (i32, i32) {
    %c0_i32 = arith.constant 0 : i32
    %c0_i32_0 = arith.constant 0 : i32
    %c0_i32_1 = arith.constant 0 : i32
    return %c0_i32, %c0_i32_0 : i32, i32
  }
  func.func @transform_4(%arg0: i32) -> (i32, i32, i32) {
    %c0_i32 = arith.constant 0 : i32
    %c0_i32_0 = arith.constant 0 : i32
    %c0_i32_1 = arith.constant 0 : i32
    %c0_i32_2 = arith.constant 0 : i32
    return %c0_i32, %c0_i32_0, %c0_i32_1 : i32, i32, i32
  }
  func.func @transform_5(%arg0: i32) -> (i32, i32, i32) {
    %c0_i32 = arith.constant 0 : i32
    %c0_i32_0 = arith.constant 0 : i32
    %c0_i32_1 = arith.constant 0 : i32
    return %arg0, %c0_i32, %c0_i32_0 : i32, i32, i32
  }
}

</mosaic_0001>

<bundles_post_ra>
// kernel: tpu_custom_call.1
= control target key start
LH: loop header
LB: loop body
LE: loop exit
PB: predicated region body
PF: predicated region fallthrough
CT: control target
= control target key end

     0   :  { %10 = vsyncpa [#allocation3], 0  ;;  %s3413_s0 = inlined_call_operand.vmem [shape: bf16[2,5,192], index: 0, kind: input, shape index: {}]   ;;  %s3414_s1 = inlined_call_operand.vmem [shape: bf16[5,32,128], index: 1, kind: input, shape index: {}]   ;;  %s3415_s2 = inlined_call_operand.vmem [shape: bf16[512,32], index: 2, kind: input, shape index: {}]   ;;  %s3416_s3 = inlined_call_operand.vmem [shape: f32[21,32], index: 3, kind: input, shape index: {}]   ;;  %s3417_s4 = inlined_call_operand.vmem [shape: f32[2,2,128], index: 4, kind: input, shape index: {}]   ;;  %s3418_s5 = inlined_call_operand.hbm [shape: f32[2,1,128], index: 5, kind: output, shape index: {}]  }
   0x1   :  { %12 = vsyncpa [#allocation3 + $0x1], 0  ;;  %s2869_s18 = smov 0   ;;  %s2871_s19 = smov 0  }
   0x2   :  { %s2873_s20 = smov 0   ;;  %s2875_s21 = smov 0  }
   0x3 LB: > { %s2890_s22 = sadd.s32 4294967295, %s2824_s21   ;;  %s2236_s23 = sadd.s32 4294967294, %s2824_s21   ;;  %s2824_s21 = sphi %s2875_s21, %s3424_s21   ;;  %s2820_s20 = sphi %s2873_s20, %s3423_s20   ;;  %s2816_s19 = sphi %s2871_s19, %s3422_s19   ;;  %s2812_s18 = sphi %s2869_s18, %s3421_s18  }
   0x4   : > { %s2894_s24 = sadd.s32 1, %s2824_s21   ;;  %s135_s25 = sadd.s32 1, %s2820_s20 }
   0x5   : > { %s132_s26 = ssub.s32 %s2824_s21, %s2894_s24  ;;  %p145_p0 = scmp.ne.s32.totalorder %s2820_s20, %s2816_s19 }
   0x6   : > { %p133_p1 = scmp.eq.s32.totalorder %s132_s26, 0  ;;  %p146_p2 = scmp.eq.s32.totalorder %s2890_s22, 1 }
   0x7   : > { %p151_p3 = scmp.ne.s32.totalorder %s2816_s19, %s2812_s18  ;;  %p152_p4 = scmp.eq.s32.totalorder %s2236_s23, 1 }
   0x8   : > { %s2905_s27 = scalar_select %p133_p1, %s2820_s20, %s135_s25  }
   0x9   : > { %p2907_p5 = por %p146_p2, %p145_p0  ;;  %p2911_p6 = por %p152_p4, %p151_p3 }
   0xa   : > { %p2239_p7 = scmp.ge.s32.totalorder %s2824_s21, 1  ;;  %p190_p8 = scmp.lt.s32.totalorder %s2824_s21, 3 }
   0xc   : > { %p191_p9 = pnand %p2239_p7, %p190_p8 }
   0xd   : > { %v2666_v0 = vld [vmem:[%s3415_s2] sm:$0xff] (!%p191_p9)   ;;  %v2826_v1 = vmov (!%p191_p9), 0   ;;  %p217_p10 = scmp.lt.s32.totalorder (!%p191_p9), %s2890_s22, 1  ;;  %v2667_v2 = vld [vmem:[%s3415_s2 + $0x8] sm:$0xff] (!%p191_p9)   ;;  %v2668_v3 = vld [vmem:[%s3415_s2 + $0x10] sm:$0xff] (!%p191_p9)   ;;  %vm327_vm0 = vcmask (!%p191_p9), 523264  }
   0xe   : > { %194 = sbr.rel (%p191_p9) target bundleno = 5542 (0x15a6), region = 40  ;;  %331 = vmatprep.subr.bf16.mxu0 (!%p191_p9), %v2826_v1  ;;  %v2669_v4 = vld [vmem:[%s3415_s2 + $0x18] sm:$0xff] (!%p191_p9)   ;;  %v2670_v5 = vld [vmem:[%s3415_s2 + $0x20] sm:$0xff] (!%p191_p9)   ;;  %v2671_v8 = vld [vmem:[%s3415_s2 + $0x28] sm:$0xff] (!%p191_p9)   ;;  %vm373_vm1 = vcmask (!%p191_p9), 258048   ;;  %v2827_v43 = vmov (!%p191_p9), 0.0  }
   0xf   : > { %332 = vmatpush1.bf16.msra.mxu0 (!%p191_p9), %v2666_v0  ;;  %v2672_v9 = vld [vmem:[%s3415_s2 + $0x30] sm:$0xff] (!%p191_p9)   ;;  %v2673_v10 = vld [vmem:[%s3415_s2 + $0x38] sm:$0xff] (!%p191_p9)   ;;  %v2674_v11 = vld [vmem:[%s3415_s2 + $0x40] sm:$0xff] (!%p191_p9)   ;;  %2423 = vmatprep.subr.bf16.mxu1 (!%p191_p9), %v2827_v43  ;;  %vm2828_vm2 = vmmov (!%p191_p9), 0   ;;  %vm474_vm3 = vcmask (!%p191_p9), 261120   ;;  %s2829_s23 = smov (!%p191_p9), 112  }
  0x10   : > { %333 = vmatprep.subr.bf16.mxu0 (!%p191_p9), %v2826_v1  ;;  %v2675_v12 = vld [vmem:[%s3415_s2 + $0x48] sm:$0xff] (!%p191_p9)   ;;  %v2676_v13 = vld [vmem:[%s3415_s2 + $0x50] sm:$0xff] (!%p191_p9)   ;;  %v2677_v14 = vld [vmem:[%s3415_s2 + $0x58] sm:$0xff] (!%p191_p9)   ;;  %2427 = vmatprep.mubr.msk.bf16.mxu1 (!%p191_p9), %vm2828_vm2, %v2827_v43  ;;  %s2830_s25 = smov (!%p191_p9), 120   ;;  %s2831_s26 = smov (!%p191_p9), 104   ;;  %vm535_vm4 = vcmask (!%p191_p9), 64512  }
  0x11   : > { %v248_v16 = vld [vmem:[%s3416_s3] sm:$0x1f] (!%p191_p9)  ;;  %v2257_v34 = vld [vmem:[%s3416_s3 + $0x5] ss:$0 sm:$0xff] (!%p191_p9)  ;;  %v2258_v36 = vld [vmem:[%s3416_s3 + $0x6] ss:$0 sm:$0xff] (!%p191_p9) }
  0x12   : > { %v2680_v42 = vld [vmem:[%s3414_s1] sm:$0xff] (!%p191_p9)   ;;  %v2681_v44 = vld [vmem:[%s3414_s1 + $0x8] sm:$0xff] (!%p191_p9)   ;;  %s2832_s30 = smov (!%p191_p9), 96   ;;  %vm729_vm5 = vcmask (!%p191_p9), 36864   ;;  %s2833_s6 = smov (!%p191_p9), 64   ;;  %vm784_vm6 = vcmask (!%p191_p9), 1041408  }
  0x13   : > { %334 = vmatpush1.bf16.msra.mxu0 (!%p191_p9), %v2667_v2  ;;  %2424 = vmatpush3.bf16.msra.mxu1 (!%p191_p9), %v2680_v42  ;;  %v2263_v54 = vld [vmem:[%s3416_s3 + $0x9] ss:$0 sm:$0xff] (!%p191_p9)  ;;  %v2264_v56 = vld [vmem:[%s3416_s3 + $0xa] ss:$0 sm:$0xff] (!%p191_p9)  ;;  %v2265_v60 = vld [vmem:[%s3417_s4] ss:$0 sm:$0xff] (!%p191_p9) }
  0x14   : > { %335 = vmatprep.subr.bf16.mxu0 (!%p191_p9), %v2826_v1  ;;  %2425 = vmatprep.subr.bf16.mxu1 (!%p191_p9), %v2827_v43  ;;  %vm785_vm7 = vcmask (!%p191_p9), 1042432   ;;  %vm780_vm8 = vcmask (!%p191_p9), 39936   ;;  %s2835_s11 = smov (!%p191_p9), 8   ;;  %s2837_s13 = smov (!%p191_p9), 16   ;;  %vm988_vm9 = vcmask (!%p191_p9), 130048   ;;  %vm990_vm10 = vcmask (!%p191_p9), 195584  }
  0x15   : > { %s218_s9 = scalar_select %p217_p10, %s2890_s22, 1  ;;  %vm2088_vm11 = vcmask 253952  }
  0x16   : > { %s215_s16 = sand.u32 1, %s2816_s19   ;;  %s2348_s8 = sshll.u32 %s2890_s22, 4 }
  0x17   : > { %s2351_s12 = sshll.u32 %s218_s9, 3  ;;  %336 = vmatpush1.bf16.msra.mxu0 %v2668_v3  ;;  %2426 = vmatpush3.bf16.msra.mxu1 %v2681_v44  ;;  %s216_s17 = scalar_lea.vmem [#allocation2], %s215_s16 }
  0x18   : > { %s221_s15 = scalar_lea.vmem %s3413_s0, %s2351_s12  ;;  %337 = vmatprep.subr.bf16.mxu0 %v2826_v1  ;;  %2431 = vmatprep.subr.bf16.mxu1 %v2827_v43  ;;  %s2836_s12 = smov 24  }
  0x19   : > { %v247_v6 = vld [vmem:[%s221_s15] sm:$0x77]  ;;  %s2181_s7 = sshll.u32 %s216_s17, 4  ;;  %s2838_s22 = smov [#allocation2]   ;;  %s3368_s7 = int_to_ptr.vmem [resolvable:$true] %s2181_s7 }
  0x1a   : > { %v2243_v7 = vcombine.high %v247_v6, %v247_v6  ;;  %v2242_v15 = vcombine.low %v247_v6, %v247_v6 }
  0x1b   : > { %338 = vmatpush1.bf16.msra.mxu0 %v2669_v4 }
  0x1c   : > { %339 = vmatprep.subr.bf16.mxu0 %v2826_v1  ;;  %2256 = vmatprep.mubr.msk.bf16.mxu0 %vm327_vm0, %v2243_v7 }
  0x1f   : > { %340 = vmatpush1.bf16.msra.mxu0 %v2670_v5 }
  0x20   : > { %341 = vmatprep.subr.bf16.mxu0 %v2826_v1 }
  0x23   : > { %342 = vmatpush1.bf16.msra.mxu0 %v2671_v8 }
  0x24   : > { %343 = vmatprep.subr.bf16.mxu0 %v2826_v1 }
  0x27   : > { %344 = vmatpush1.bf16.msra.mxu0 %v2672_v9 }
  0x28   : > { %345 = vmatprep.subr.bf16.mxu0 %v2826_v1 }
  0x2b   : > { %346 = vmatpush1.bf16.msra.mxu0 %v2673_v10 }
  0x2c   : > { %347 = vmatprep.subr.bf16.mxu0 %v2826_v1 }
  0x2f   : > { %348 = vmatpush1.bf16.msra.mxu0 %v2674_v11 }
  0x30   : > { %349 = vmatprep.subr.bf16.mxu0 %v2826_v1 }
  0x33   : > { %350 = vmatpush1.bf16.msra.mxu0 %v2675_v12 }
  0x34   : > { %351 = vmatprep.subr.bf16.mxu0 %v2826_v1 }
  0x37   : > { %352 = vmatpush1.bf16.msra.mxu0 %v2676_v13 }
  0x38   : > { %353 = vmatprep.subr.bf16.mxu0 %v2826_v1 }
  0x3b   : > { %354 = vmatpush1.bf16.msra.mxu0 %v2677_v14 }
  0x3c   : > { %2473 = vmatprep.subr.bf16.mxu0 %v2827_v43 }
  0x3e   : > { %364 = vmatmul.mubr.bf16.vlgmr.msra.gmra.mrb[0].mxu0 %v2242_v15 }
  0x3f   : > { %2475 = vmatprep.mubr.msk.bf16.mxu0 %vm2828_vm2, %v2827_v43 }
 0x111   : > { %v365_v17 = vpop.f32.mrb[0].mxu0 }
 0x112   : > { %v366_v18 = vadd.f32 %v365_v17, %v248_v16  ;;  %v367_v19 = vpop.f32.mrb[1].mxu0 }
 0x113   : > { %v368_v20 = vpop.f32.mrb[2].mxu0 }
 0x114   : > { %v369_v21 = vpop.f32.mrb[3].mxu0  ;;  %v374_v22 = vsel %vm373_vm1, %v366_v18, 0.0  ;;  %v379_v23 = vmul.f32 %v366_v18, %v366_v18 }
 0x115   : > { %375 = vadd.xlane.f32.xlu0 %v374_v22 }
 0x116   : > { %v380_v24 = vsel %vm373_vm1, %v379_v23, 0.0 }
 0x119   : > { %381 = vadd.xlane.f32.xlu0 %v380_v24 }
 0x1a2   : > { %v376_v25 = vpop.xlane.xlu0 %375 }
 0x1a3   : > { %v378_v26 = vmul.f32 0.03125, %v376_v25 }
 0x1a5   : > { %v384_v28 = vmul.f32 %v378_v26, %v378_v26  ;;  %v386_v32 = vsub.f32 %v366_v18, %v378_v26 }
 0x1a6   : > { %v382_v27 = vpop.xlane.xlu0 %381 }
 0x1a7   : > { %v383_v29 = vmul.f32 0.03125, %v382_v27 }
 0x1a9   : > { %v385_v30 = vsub.f32 %v383_v29, %v384_v28 }
 0x1ab   : > { %v387_v31 = vadd.f32 1e-05, %v385_v30 }
 0x1ad   : > { %2710 = vrsqrt.f32 %v387_v31 }
 0x1b7   : > { %v2711_v33 = vpop.eup %2710 }
 0x1b8   : > { %v389_v35 = vmul.f32 %v2711_v33, %v386_v32 }
 0x1ba   : > { %v394_v37 = vmul.f32 %v2257_v34, %v389_v35 }
 0x1bc   : > { %v2969_v38 = vadd.f32 %v2258_v36, %v394_v37  ;;  %v2834_v37 = vmov 65535  }
 0x1be   : > { %v431_v39 = vsel %vm373_vm1, %v2969_v38, 0.0  ;;  %v435_v40 = vmul.f32 %v2969_v38, %v2969_v38 }
 0x1bf   : > { %432 = vadd.xlane.f32.xlu1 %v431_v39  ;;  %v786_v39 = vsel %vm784_vm6, 4294967295, %v2834_v37 }
 0x1c0   : > { %v436_v41 = vsel %vm373_vm1, %v435_v40, 0.0  ;;  %v3047_v42 = vsel %vm785_vm7, %v786_v39, 0 }
 0x1c3   : > { %437 = vadd.xlane.f32.xlu1 %v436_v41 }
 0x24c   : > { %v433_v45 = vpop.xlane.xlu1 %432 }
 0x24d   : > { %v434_v46 = vmul.f32 0.03125, %v433_v45 }
 0x24f   : > { %v440_v48 = vmul.f32 %v434_v46, %v434_v46  ;;  %v442_v52 = vsub.f32 %v2969_v38, %v434_v46 }
 0x250   : > { %v438_v47 = vpop.xlane.xlu1 %437 }
 0x251   : > { %v439_v49 = vmul.f32 0.03125, %v438_v47 }
 0x253   : > { %v441_v50 = vsub.f32 %v439_v49, %v440_v48 }
 0x255   : > { %v443_v51 = vadd.f32 1e-05, %v441_v50 }
 0x257   : > { %2712 = vrsqrt.f32 %v443_v51 }
 0x261   : > { %v2713_v53 = vpop.eup %2712 }
 0x262   : > { %v445_v55 = vmul.f32 %v2713_v53, %v442_v52 }
 0x264   : > { %v450_v57 = vmul.f32 %v2263_v54, %v445_v55 }
 0x266   : > { %v455_v58 = vadd.f32 %v2264_v56, %v450_v57 }
 0x268   : > { %v456_v59 = vpack.c.bf16 %v455_v58, %v455_v58 }
 0x26a   : > { %2428 = vmatmul.mubr.msk.bf16.vlgmr.msra.gmra.mrb[0].mxu1 %vm474_vm3, %v456_v59 }
 0x26b   : > { %2433 = vmatprep.mubr.msk.bf16.mxu1 %vm2828_vm2, %v2827_v43 }
 0x33d   : > { %v512_v61 = vpop.f32.mrb[0].mxu1 }
 0x33e   : > { %v513_v62 = vadd.f32 %v2265_v60, %v512_v61  ;;  %v2429_v63 = vpop.f32.mrb[1].mxu1 }
 0x33f   : > { %v515_v0 = vpop.f32.mrb[2].mxu1 }
 0x340   : > { %522 = vrot.lane.b32.xlu1 %v513_v62, %s2829_s23  ;;  %519 = vrot.lane.b32.xlu0 %v513_v62, %s2830_s25  ;;  %v2430_v1 = vpop.f32.mrb[3].mxu1  ;;  %v528_v2 = vpack.c.bf16 %v513_v62, %v513_v62 }
 0x344   : > { %525 = vrot.lane.b32.xlu1 %v513_v62, %s2831_s26 }
 0x348   : > { %533 = vrot.lane.b32.xlu1 %v528_v2, %s2832_s30 }
 0x3b2   : > { %v523_v3 = vpop.permute.xlu1 %522  ;;  %v520_v4 = vpop.permute.xlu0 %519 }
 0x3b3   : > { %v3007_v5 = vpack.c.bf16 %v523_v3, %v523_v3  ;;  %v3009_v6 = vpack.c.bf16 %v520_v4, %v520_v4 }
 0x3b5   : > { %583 = vrot.lane.b32.xlu0 %v3009_v6, %s2832_s30  ;;  %632 = vrot.lane.b32.xlu1 %v3007_v5, %s2832_s30 }
 0x3b6   : > { %v526_v7 = vpop.permute.xlu1 %525 }
 0x3b7   : > { %v3015_v8 = vpack.c.bf16 %v526_v7, %v526_v7 }
 0x3b9   : > { %681 = vrot.lane.b32.xlu0 %v3015_v8, %s2832_s30 }
 0x3ba   : > { %v534_v9 = vpop.permute.xlu1 %533 }
 0x3bb   : > { %v540_v10 = vsel %vm535_vm4, %v534_v9, 0 }
 0x3bc   : > { %2432 = vmatpush3.bf16.xpose.msra.mxu1 %v540_v10 }
 0x3bd   : > { %2437 = vmatprep.subr.bf16.mxu1 %v2827_v43 }
 0x3c3   : > { %2434 = vmatmul.mubr.msk.bf16.vlgmr.msra.gmra.mrb[4].mxu1 %vm535_vm4, %v528_v2 }
 0x3c4   : > { %2439 = vmatprep.mubr.msk.bf16.mxu1 %vm2828_vm2, %v2827_v43 }
 0x427   : > { %v584_v11 = vpop.permute.xlu0 %583  ;;  %v633_v13 = vpop.permute.xlu1 %632 }
 0x428   : > { %v589_v12 = vsel %vm535_vm4, %v584_v11, 0  ;;  %v638_v14 = vsel %vm535_vm4, %v633_v13, 0 }
 0x429   : > { %2438 = vmatpush3.bf16.xpose.msra.mxu1 %v589_v12 }
 0x42a   : > { %2443 = vmatprep.subr.bf16.mxu1 %v2827_v43 }
 0x42b   : > { %v682_v15 = vpop.permute.xlu0 %681 }
 0x42c   : > { %v687_v16 = vsel %vm535_vm4, %v682_v15, 0 }
 0x430   : > { %2440 = vmatmul.mubr.msk.bf16.vlgmr.msra.gmra.mrb[8].mxu1 %vm535_vm4, %v3009_v6 }
 0x431   : > { %2444 = vmatpush3.bf16.xpose.msra.mxu1 %v638_v14  ;;  %2445 = vmatprep.mubr.msk.bf16.mxu1 %vm2828_vm2, %v2827_v43 }
 0x432   : > { %2449 = vmatprep.subr.bf16.mxu1 %v2827_v43 }
 0x438   : > { %2446 = vmatmul.mubr.msk.bf16.vlgmr.msra.gmra.mrb[12].mxu1 %vm535_vm4, %v3007_v5 }
 0x439   : > { %2450 = vmatpush3.bf16.xpose.msra.mxu1 %v687_v16  ;;  %2451 = vmatprep.mubr.msk.bf16.mxu1 %vm2828_vm2, %v2827_v43 }
 0x43a   : > { %2455 = vmatprep.subr.bf16.mxu1 %v2827_v43 }
 0x440   : > { %2452 = vmatmul.mubr.msk.bf16.vlgmr.msra.gmra.mrb[16].mxu1 %vm535_vm4, %v3015_v8 }
 0x441   : > { %2457 = vmatprep.mubr.msk.bf16.mxu1 %vm2828_vm2, %v2827_v43 }
 0x496   : > { %v576_v17 = vpop.f32.mrb[4].mxu1 }
 0x497   : > { %v2435_v18 = vpop.f32.mrb[5].mxu1  ;;  %v730_v19 = vsel %vm729_vm5, %v576_v17, -inf }
 0x498   : > { %731 = vmax.xlane.f32.xlu1 %v730_v19  ;;  %v579_v20 = vpop.f32.mrb[6].mxu1 }
 0x499   : > { %v2436_v21 = vpop.f32.mrb[7].mxu1 }
 0x4a9   : > { %778 = vrot.lane.b32.xlu1 %v528_v2, %s2833_s6 }
 0x503   : > { %v625_v22 = vpop.f32.mrb[8].mxu1 }
 0x504   : > { %v2441_v23 = vpop.f32.mrb[9].mxu1  ;;  %v733_v24 = vsel %vm729_vm5, %v625_v22, -inf }
 0x505   : > { %734 = vmax.xlane.f32.xlu0 %v733_v24  ;;  %v628_v25 = vpop.f32.mrb[10].mxu1 }
 0x506   : > { %v2442_v26 = vpop.f32.mrb[11].mxu1 }
 0x507   : > { %v2682_v26 = vld [vmem:[%s3415_s2 + $0x60] sm:$0xff]  }
 0x50b   : > { %v674_v27 = vpop.f32.mrb[12].mxu1 }
 0x50c   : > { %v2447_v28 = vpop.f32.mrb[13].mxu1  ;;  %v736_v29 = vsel %vm729_vm5, %v674_v27, -inf }
 0x50d   : > { %737 = vmax.xlane.f32.xlu0 %v736_v29  ;;  %v677_v30 = vpop.f32.mrb[14].mxu1 }
 0x50e   : > { %v2448_v31 = vpop.f32.mrb[15].mxu1 }
 0x513   : > { %v723_v32 = vpop.f32.mrb[16].mxu1 }
 0x514   : > { %v2453_v33 = vpop.f32.mrb[17].mxu1  ;;  %v739_v34 = vsel %vm729_vm5, %v723_v32, -inf }
 0x515   : > { %740 = vmax.xlane.f32.xlu0 %v739_v34  ;;  %v726_v35 = vpop.f32.mrb[18].mxu1 }
 0x516   : > { %v2454_v36 = vpop.f32.mrb[19].mxu1 }
 0x525   : > { %v732_v40 = vpop.xlane.xlu1 %731 }
 0x526   : > { %v742_v41 = vsub.f32 %v576_v17, %v732_v40 }
 0x528   : > { %v746_v44 = vmul.f32 1.442695, %v742_v41 }
 0x529   : > { %v779_v45 = vpop.permute.xlu1 %778 }
 0x52a   : > { %2714 = vpow2.f32 %v746_v44  ;;  %v789_v46 = vand.u32 %v3047_v42, %v779_v45 }
 0x52c   : > { %2456 = vmatpush3.bf16.msra.mxu1 %v789_v46 }
 0x52d   : > { %2461 = vmatprep.subr.bf16.mxu1 %v2827_v43 }
 0x534   : > { %v2715_v47 = vpop.eup %2714 }
 0x535   : > { %v754_v48 = vsel %vm729_vm5, %v2715_v47, 0.0 }
 0x536   : > { %755 = vadd.xlane.f32.xlu1 %v754_v48 }
 0x592   : > { %v735_v49 = vpop.xlane.xlu0 %734 }
 0x593   : > { %v743_v50 = vsub.f32 %v625_v22, %v735_v49 }
 0x595   : > { %v748_v51 = vmul.f32 1.442695, %v743_v50 }
 0x597   : > { %2716 = vpow2.f32 %v748_v51  ;;  %v2280_v51 = vld [vmem:[%s3416_s3 + $0xd] ss:$0 sm:$0xff] }
 0x59a   : > { %v738_v52 = vpop.xlane.xlu0 %737 }
 0x59b   : > { %v744_v53 = vsub.f32 %v674_v27, %v738_v52  ;;  %v2683_v27 = vld [vmem:[%s3415_s2 + $0x68] sm:$0xff]  }
 0x59d   : > { %v750_v54 = vmul.f32 1.442695, %v744_v53 }
 0x59f   : > { %2718 = vpow2.f32 %v750_v54 }
 0x5a1   : > { %v2717_v55 = vpop.eup %2716 }
 0x5a2   : > { %v741_v56 = vpop.xlane.xlu0 %740  ;;  %v757_v57 = vsel %vm729_vm5, %v2717_v55, 0.0 }
 0x5a3   : > { %v745_v58 = vsub.f32 %v723_v32, %v741_v56  ;;  %758 = vadd.xlane.f32.xlu0 %v757_v57 }
 0x5a5   : > { %v752_v59 = vmul.f32 1.442695, %v745_v58 }
 0x5a7   : > { %2720 = vpow2.f32 %v752_v59 }
 0x5a9   : > { %v2719_v60 = vpop.eup %2718 }
 0x5aa   : > { %v760_v61 = vsel %vm729_vm5, %v2719_v60, 0.0 }
 0x5ab   : > { %761 = vadd.xlane.f32.xlu1 %v760_v61 }
 0x5b1   : > { %v2721_v62 = vpop.eup %2720 }
 0x5b2   : > { %v763_v63 = vsel %vm729_vm5, %v2721_v62, 0.0 }
 0x5b3   : > { %764 = vadd.xlane.f32.xlu0 %v763_v63 }
 0x5bc   : > { %879 = vrot.lane.b32.xlu1 %v3007_v5, %s2833_s6 }
 0x5c0   : > { %927 = vrot.lane.b32.xlu1 %v3015_v8, %s2833_s6 }
 0x5c3   : > { %v756_v0 = vpop.xlane.xlu1 %755 }
 0x5c4   : > { %2722 = vrcp.f32 %v756_v0 }
 0x5c9   : > { %831 = vrot.lane.b32.xlu0 %v3009_v6, %s2833_s6 }
 0x5ce   : > { %v2723_v1 = vpop.eup %2722 }
 0x5cf   : > { %v770_v2 = vmul.f32 %v2723_v1, %v2715_v47 }
 0x5d1   : > { %v774_v3 = vpack.c.bf16 %v770_v2, %v770_v2 }
 0x5d3   : > { %2458 = vmatmul.mubr.msk.bf16.vlgmr.msra.gmra.mrb[20].mxu1 %vm780_vm8, %v774_v3 }
 0x5d4   : > { %2463 = vmatprep.mubr.msk.bf16.mxu1 %vm2828_vm2, %v2827_v43 }
 0x630   : > { %v759_v4 = vpop.xlane.xlu0 %758 }
 0x631   : > { %2724 = vrcp.f32 %v759_v4 }
 0x638   : > { %v762_v5 = vpop.xlane.xlu1 %761 }
 0x639   : > { %2726 = vrcp.f32 %v762_v5 }
 0x63b   : > { %v2725_v10 = vpop.eup %2724 }
 0x63c   : > { %v880_v7 = vpop.permute.xlu1 %879  ;;  %v771_v6 = vmul.f32 %v2725_v10, %v2717_v55 }
 0x63d   : > { %v885_v16 = vand.u32 %v880_v7, %v3047_v42  ;;  %v2281_v7 = vld [vmem:[%s3416_s3 + $0xb] ss:$0 sm:$0xff] }
 0x63e   : > { %v775_v14 = vpack.c.bf16 %v771_v6, %v771_v6 }
 0x640   : > { %v928_v8 = vpop.permute.xlu1 %927  ;;  %v765_v9 = vpop.xlane.xlu0 %764 }
 0x641   : > { %v933_v11 = vand.u32 %v928_v8, %v3047_v42  ;;  %2728 = vrcp.f32 %v765_v9  ;;  %v2282_v9 = vld [vmem:[%s3416_s3 + $0xc] ss:$0 sm:$0xff] }
 0x643   : > { %2474 = vmatpush3.bf16.msra.mxu0 %v933_v11  ;;  %v2727_v15 = vpop.eup %2726 }
 0x644   : > { %v832_v12 = vpop.permute.xlu0 %831  ;;  %2487 = vmatprep.subr.bf16.mxu0 %v2827_v43  ;;  %v772_v18 = vmul.f32 %v2727_v15, %v2719_v60  ;;  %v2684_v60 = vld [vmem:[%s3414_s1 + $0x10] sm:$0xff]   ;;  %v2689_v15 = vld [vmem:[%s3415_s2 + $0x98] sm:$0xff]  }
 0x645   : > { %v837_v13 = vand.u32 %v832_v12, %v3047_v42  ;;  %v2686_v12 = vld [vmem:[%s3415_s2 + $0x80] sm:$0xff]  }
 0x646   : > { %v776_v21 = vpack.c.bf16 %v772_v18, %v772_v18  ;;  %v2692_v18 = vld [vmem:[%s3415_s2 + $0xb0] sm:$0xff]  }
 0x647   : > { %2462 = vmatpush3.bf16.msra.mxu1 %v837_v13  ;;  %v2687_v13 = vld [vmem:[%s3415_s2 + $0x88] sm:$0xff]  }
 0x648   : > { %2467 = vmatprep.subr.bf16.mxu1 %v2827_v43 }
 0x64a   : > { %2464 = vmatmul.mubr.msk.bf16.vlgmr.msra.gmra.mrb[24].mxu1 %vm780_vm8, %v775_v14  ;;  %v2688_v14 = vld [vmem:[%s3415_s2 + $0x90] sm:$0xff]  }
 0x64b   : > { %v2729_v17 = vpop.eup %2728  ;;  %2468 = vmatpush3.bf16.msra.mxu1 %v885_v16  ;;  %2469 = vmatprep.mubr.msk.bf16.mxu1 %vm2828_vm2, %v2827_v43  ;;  %v2690_v16 = vld [vmem:[%s3415_s2 + $0xa0] sm:$0xff]  }
 0x64c   : > { %v773_v19 = vmul.f32 %v2729_v17, %v2721_v62  ;;  %2479 = vmatprep.subr.bf16.mxu1 %v2827_v43  ;;  %v2691_v17 = vld [vmem:[%s3415_s2 + $0xa8] sm:$0xff]  }
 0x64e   : > { %v777_v20 = vpack.c.bf16 %v773_v19, %v773_v19  ;;  %v2693_v19 = vld [vmem:[%s3415_s2 + $0xb8] sm:$0xff]  }
 0x650   : > { %2476 = vmatmul.mubr.msk.bf16.vlgmr.msra.gmra.mrb[4].mxu0 %vm780_vm8, %v777_v20  ;;  %v2283_v20 = vld [vmem:[%s3417_s4 + $0x1] ss:$0 sm:$0xff] }
 0x651   : > { %2491 = vmatprep.mubr.msk.bf16.mxu0 %vm2828_vm2, %v2827_v43  ;;  %2488 = vmatpush3.bf16.msra.mxu0 %v2684_v60 }
 0x652   : > { %2470 = vmatmul.mubr.msk.bf16.vlgmr.msra.gmra.mrb[28].mxu1 %vm780_vm8, %v776_v21  ;;  %2489 = vmatprep.subr.bf16.mxu0 %v2827_v43 }
 0x653   : > { %2483 = vmatprep.mubr.msk.bf16.mxu1 %vm2828_vm2, %v2827_v43  ;;  %2480 = vmatpush3.bf16.msra.mxu1 %v2682_v26 }
 0x654   : > { %2481 = vmatprep.subr.bf16.mxu1 %v2827_v43 }
 0x657   : > { %2482 = vmatpush3.bf16.msra.mxu1 %v2683_v27 }
 0x658   : > { %2495 = vmatprep.subr.bf16.mxu1 %v2827_v43 }
 0x6a6   : > { %v825_v22 = vpop.f32.mrb[20].mxu1 }
 0x6a7   : > { %v2459_v23 = vpop.f32.mrb[21].mxu1 }
 0x6a8   : > { %v828_v24 = vpop.f32.mrb[22].mxu1 }
 0x6a9   : > { %v2460_v25 = vpop.f32.mrb[23].mxu1 }
 0x71d   : > { %v873_v28 = vpop.f32.mrb[24].mxu1 }
 0x71e   : > { %976 = vrot.lane.b32.xlu1 %v873_v28, %s2835_s11  ;;  %v2465_v29 = vpop.f32.mrb[25].mxu1 }
 0x71f   : > { %v876_v30 = vpop.f32.mrb[26].mxu1 }
 0x720   : > { %v2466_v31 = vpop.f32.mrb[27].mxu1 }
 0x723   : > { %v969_v32 = vpop.f32.mrb[4].mxu0 }
 0x724   : > { %v2477_v33 = vpop.f32.mrb[5].mxu0  ;;  %984 = vrot.lane.b32.xlu1 %v969_v32, %s2836_s12 }
 0x725   : > { %v921_v34 = vpop.f32.mrb[28].mxu1  ;;  %v972_v35 = vpop.f32.mrb[6].mxu0 }
 0x726   : > { %v2478_v36 = vpop.f32.mrb[7].mxu0  ;;  %980 = vrot.lane.b32.xlu0 %v921_v34, %s2837_s13  ;;  %v2471_v37 = vpop.f32.mrb[29].mxu1  ;;  %v2296_v34 = vld [vmem:[%s3416_s3 + $0xe] ss:$0 sm:$0xff] }
 0x727   : > { %v924_v39 = vpop.f32.mrb[30].mxu1 }
 0x728   : > { %v2472_v40 = vpop.f32.mrb[31].mxu1 }
 0x790   : > { %v977_v41 = vpop.permute.xlu1 %976 }
 0x791   : > { %v987_v44 = vsel %vm535_vm4, %v825_v22, %v977_v41 }
 0x796   : > { %v985_v46 = vpop.permute.xlu1 %984 }
 0x798   : > { %v981_v45 = vpop.permute.xlu0 %980 }
 0x799   : > { %v989_v47 = vsel %vm988_vm9, %v987_v44, %v981_v45 }
 0x79a   : > { %v991_v48 = vsel %vm990_vm10, %v989_v47, %v985_v46  ;;  %v2694_v46 = vld [vmem:[%s3414_s1 + $0x20] sm:$0xff]   ;;  %v2695_v47 = vld [vmem:[%s3414_s1 + $0x28] sm:$0xff]  }
 0x79b   : > { %v992_v49 = vpack.c.bf16 %v991_v48, %v991_v48 }
 0x79d   : > { %2484 = vmatmul.mubr.msk.bf16.vlgmr.msra.gmra.mrb[32].mxu1 %vm474_vm3, %v992_v49 }
 0x79e   : > { %2511 = vmatprep.mubr.msk.bf16.mxu1 %vm2828_vm2, %v2827_v43  ;;  %2496 = vmatpush3.bf16.msra.mxu1 %v2686_v12 }
 0x79f   : > { %2497 = vmatprep.subr.bf16.mxu1 %v2827_v43 }
 0x7a2   : > { %2498 = vmatpush3.bf16.msra.mxu1 %v2687_v13 }
 0x7a3   : > { %2499 = vmatprep.subr.bf16.mxu1 %v2827_v43 }
 0x7a6   : > { %2500 = vmatpush3.bf16.msra.mxu1 %v2688_v14 }
 0x7a7   : > { %2501 = vmatprep.subr.bf16.mxu1 %v2827_v43 }
 0x7aa   : > { %2502 = vmatpush3.bf16.msra.mxu1 %v2689_v15 }
 0x7ab   : > { %2503 = vmatprep.subr.bf16.mxu1 %v2827_v43 }
 0x7ae   : > { %2504 = vmatpush3.bf16.msra.mxu1 %v2690_v16 }
 0x7af   : > { %2505 = vmatprep.subr.bf16.mxu1 %v2827_v43 }
 0x7b2   : > { %2506 = vmatpush3.bf16.msra.mxu1 %v2691_v17 }
 0x7b3   : > { %2507 = vmatprep.subr.bf16.mxu1 %v2827_v43 }
 0x7b6   : > { %2508 = vmatpush3.bf16.msra.mxu1 %v2692_v18 }
 0x7b7   : > { %2509 = vmatprep.subr.bf16.mxu1 %v2827_v43 }
 0x7ba   : > { %2510 = vmatpush3.bf16.msra.mxu1 %v2693_v19 }
 0x7bb   : > { %2541 = vmatprep.subr.bf16.mxu1 %v2827_v43 }
 0x870   : > { %v1042_v50 = vpop.f32.mrb[32].mxu1 }
 0x871   : > { %v1048_v52 = vadd.f32 %v1042_v50, %v2969_v38  ;;  %v2485_v53 = vpop.f32.mrb[33].mxu1  ;;  %v2685_v38 = vld [vmem:[%s3414_s1 + $0x18] sm:$0xff]  }
 0x872   : > { %v1045_v54 = vpop.f32.mrb[34].mxu1  ;;  %2490 = vmatpush3.bf16.msra.mxu0 %v2685_v38 }
 0x873   : > { %v3100_v55 = vadd.f32 %v2280_v51, %v1048_v52  ;;  %v2486_v56 = vpop.f32.mrb[35].mxu1  ;;  %2515 = vmatprep.subr.bf16.mxu0 %v2827_v43 }
 0x875   : > { %v1057_v57 = vsel %vm373_vm1, %v3100_v55, 0.0  ;;  %v1061_v58 = vmul.f32 %v3100_v55, %v3100_v55 }
 0x876   : > { %1058 = vadd.xlane.f32.xlu0 %v1057_v57  ;;  %v2305_v57 = vld [vmem:[%s3416_s3 + $0xf] ss:$0 sm:$0xff] }
 0x877   : > { %v1062_v59 = vsel %vm373_vm1, %v1061_v58, 0.0 }
 0x878   : > { %1063 = vadd.xlane.f32.xlu1 %v1062_v59  ;;  %v2306_v59 = vld [vmem:[%s3416_s3 + $0x10] ss:$0 sm:$0xff] }
 0x903   : > { %v1059_v61 = vpop.xlane.xlu0 %1058 }
 0x904   : > { %v1060_v62 = vmul.f32 0.03125, %v1059_v61 }
 0x905   : > { %v1064_v63 = vpop.xlane.xlu1 %1063 }
 0x906   : > { %v1066_v0 = vmul.f32 %v1060_v62, %v1060_v62  ;;  %v1065_v1 = vmul.f32 0.03125, %v1064_v63  ;;  %v1068_v4 = vsub.f32 %v3100_v55, %v1060_v62  ;;  %v2308_v62 = vld [vmem:[%s3417_s4 + $0x2] ss:$0 sm:$0xff] }
 0x908   : > { %v1067_v2 = vsub.f32 %v1065_v1, %v1066_v0 }
 0x90a   : > { %v1069_v3 = vadd.f32 1e-05, %v1067_v2 }
 0x90c   : > { %2730 = vrsqrt.f32 %v1069_v3 }
 0x916   : > { %v2731_v5 = vpop.eup %2730 }
 0x917   : > { %v1071_v8 = vmul.f32 %v2731_v5, %v1068_v4 }
 0x919   : > { %v1076_v10 = vmul.f32 %v2281_v7, %v1071_v8 }
 0x91b   : > { %v1081_v11 = vadd.f32 %v2282_v9, %v1076_v10 }
 0x91d   : > { %v1082_v6 = vpack.c.bf16 %v1081_v11, %v1081_v11 }
 0x91f   : > { %2492 = vmatmul.mubr.msk.bf16.vlgmr.msra.gmra.mrb[8].mxu0 %vm474_vm3, %v1082_v6 }
 0x920   : > { %2519 = vmatprep.mubr.msk.bf16.mxu0 %vm2828_vm2, %v2827_v43  ;;  %2516 = vmatpush3.bf16.msra.mxu0 %v2694_v46 }
 0x921   : > { %2517 = vmatprep.subr.bf16.mxu0 %v2827_v43 }
 0x924   : > { %2518 = vmatpush3.bf16.msra.mxu0 %v2695_v47 }
 0x925   : > { %2523 = vmatprep.subr.bf16.mxu0 %v2827_v43 }
 0x9f2   : > { %v1137_v21 = vpop.f32.mrb[8].mxu0 }
 0x9f3   : > { %v1138_v22 = vadd.f32 %v2283_v20, %v1137_v21  ;;  %v2493_v23 = vpop.f32.mrb[9].mxu0 }
 0x9f4   : > { %v1140_v24 = vpop.f32.mrb[10].mxu0 }
 0x9f5   : > { %v2287_v25 = vmul.f32 -1.702, %v1138_v22  ;;  %v2494_v26 = vpop.f32.mrb[11].mxu0 }
 0x9f7   : > { %v1145_v27 = vmul.f32 1.442695, %v2287_v25 }
 0x9f9   : > { %2732 = vpow2.f32 %v1145_v27 }
 0xa03   : > { %v2733_v28 = vpop.eup %2732 }
 0xa04   : > { %v1147_v29 = vadd.f32 1.0, %v2733_v28 }
 0xa06   : > { %2734 = vrcp.f32 %v1147_v29 }
 0xa10   : > { %v2735_v30 = vpop.eup %2734 }
 0xa11   : > { %v1150_v31 = vmul.f32 %v2735_v30, %v1138_v22 }
 0xa13   : > { %v1151_v32 = vpack.c.bf16 %v1150_v31, %v1150_v31 }
 0xa15   : > { %2512 = vmatmul.mubr.bf16.vlgmr.msra.gmra.mrb[36].mxu1 %v1151_v32 }
 0xa16   : > { %2543 = vmatprep.mubr.msk.bf16.mxu1 %vm2828_vm2, %v2827_v43 }
 0xae8   : > { %v1234_v33 = vpop.f32.mrb[36].mxu1 }
 0xae9   : > { %v1240_v35 = vadd.f32 %v1234_v33, %v3100_v55  ;;  %v2513_v36 = vpop.f32.mrb[37].mxu1 }
 0xaea   : > { %v1237_v37 = vpop.f32.mrb[38].mxu1 }
 0xaeb   : > { %v3166_v39 = vadd.f32 %v2296_v34, %v1240_v35  ;;  %v2514_v40 = vpop.f32.mrb[39].mxu1 }
 0xaed   : > { %v1279_v41 = vsel %vm373_vm1, %v3166_v39, 0.0  ;;  %v1283_v44 = vmul.f32 %v3166_v39, %v3166_v39 }
 0xaee   : > { %1280 = vadd.xlane.f32.xlu0 %v1279_v41 }
 0xaef   : > { %v1284_v45 = vsel %vm373_vm1, %v1283_v44, 0.0 }
 0xaf2   : > { %1285 = vadd.xlane.f32.xlu0 %v1284_v45 }
 0xb7b   : > { %v1281_v48 = vpop.xlane.xlu0 %1280 }
 0xb7c   : > { %v1282_v49 = vmul.f32 0.03125, %v1281_v48 }
 0xb7e   : > { %v1288_v51 = vmul.f32 %v1282_v49, %v1282_v49  ;;  %v1290_v55 = vsub.f32 %v3166_v39, %v1282_v49 }
 0xb7f   : > { %v1286_v50 = vpop.xlane.xlu0 %1285 }
 0xb80   : > { %v1287_v52 = vmul.f32 0.03125, %v1286_v50 }
 0xb82   : > { %v1289_v53 = vsub.f32 %v1287_v52, %v1288_v51 }
 0xb84   : > { %v1291_v54 = vadd.f32 1e-05, %v1289_v53 }
 0xb86   : > { %2736 = vrsqrt.f32 %v1291_v54 }
 0xb90   : > { %v2737_v56 = vpop.eup %2736 }
 0xb91   : > { %v1293_v58 = vmul.f32 %v2737_v56, %v1290_v55 }
 0xb93   : > { %v1298_v60 = vmul.f32 %v2305_v57, %v1293_v58 }
 0xb95   : > { %v1303_v38 = vadd.f32 %v2306_v59, %v1298_v60 }
 0xb97   : > { %v1304_v61 = vpack.c.bf16 %v1303_v38, %v1303_v38 }
 0xb99   : > { %2520 = vmatmul.mubr.msk.bf16.vlgmr.msra.gmra.mrb[12].mxu0 %vm474_vm3, %v1304_v61 }
 0xb9a   : > { %2525 = vmatprep.mubr.msk.bf16.mxu0 %vm2828_vm2, %v2827_v43 }
 0xc6c   : > { %v1360_v63 = vpop.f32.mrb[12].mxu0 }
 0xc6d   : > { %v1361_v0 = vadd.f32 %v2308_v62, %v1360_v63  ;;  %v2521_v1 = vpop.f32.mrb[13].mxu0 }
 0xc6e   : > { %v1363_v2 = vpop.f32.mrb[14].mxu0 }
 0xc6f   : > { %1370 = vrot.lane.b32.xlu1 %v1361_v0, %s2829_s23  ;;  %1367 = vrot.lane.b32.xlu0 %v1361_v0, %s2830_s25  ;;  %v2522_v3 = vpop.f32.mrb[15].mxu0  ;;  %v1376_v4 = vpack.c.bf16 %v1361_v0, %v1361_v0  ;;  %s3373_s23 = scalar_lea.hbm %s3418_s5, %s2348_s8  ;;  %s2169_s25 = scalar_lea.sflag [#allocation3], %s215_s16 }
 0xc73   : > { %1373 = vrot.lane.b32.xlu1 %v1361_v0, %s2831_s26  ;;  %s2762_s26 = scalar_lea.vmem %s3368_s7, 16 }
 0xc74   : > { %p2763_p11 = scmp.ne.s32.totalorder %s3368_s7, %s2762_s26 }
 0xc76   : > { %p2764_p12 = pnand %p2763_p11, %p2907_p5 }
 0xc77   : > { %1381 = vrot.lane.b32.xlu1 %v1376_v4, %s2832_s30 }
 0xc78   : > { %p2765_p13 = pneg %p2764_p12 }
 0xce1   : > { %v1371_v5 = vpop.permute.xlu1 %1370  ;;  %v1368_v7 = vpop.permute.xlu0 %1367 }
 0xce2   : > { %v3198_v8 = vpack.c.bf16 %v1371_v5, %v1371_v5  ;;  %v3200_v9 = vpack.c.bf16 %v1368_v7, %v1368_v7 }
 0xce4   : > { %1430 = vrot.lane.b32.xlu0 %v3200_v9, %s2832_s30  ;;  %1479 = vrot.lane.b32.xlu1 %v3198_v8, %s2832_s30 }
 0xce5   : > { %v1374_v10 = vpop.permute.xlu1 %1373 }
 0xce6   : > { %v3206_v11 = vpack.c.bf16 %v1374_v10, %v1374_v10 }
 0xce8   : > { %1528 = vrot.lane.b32.xlu0 %v3206_v11, %s2832_s30  ;;  %s2766_s30 = sshll.u32 %s2838_s22, 4  ;;  %s2767_s30 = int_to_ptr.vmem [resolvable:$false] %s2766_s30 }
 0xce9   : > { %v1382_v6 = vpop.permute.xlu1 %1381  ;;  %p2769_p0 = scmp.lt.s32.totalorder %s3368_s7, %s2767_s30 }
 0xcea   : > { %v1387_v12 = vsel %vm535_vm4, %v1382_v6, 0 }
 0xceb   : > { %2524 = vmatpush3.bf16.xpose.msra.mxu0 %v1387_v12 }
 0xcec   : > { %2529 = vmatprep.subr.bf16.mxu0 %v2827_v43 }
 0xcf2   : > { %2526 = vmatmul.mubr.msk.bf16.vlgmr.msra.gmra.mrb[16].mxu0 %vm535_vm4, %v1376_v4 }
 0xcf3   : > { %2531 = vmatprep.mubr.msk.bf16.mxu0 %vm2828_vm2, %v2827_v43 }
 0xd56   : > { %v1431_v13 = vpop.permute.xlu0 %1430  ;;  %v1480_v17 = vpop.permute.xlu1 %1479 }
 0xd57   : > { %v1436_v14 = vsel %vm535_vm4, %v1431_v13, 0  ;;  %v1485_v18 = vsel %vm535_vm4, %v1480_v17, 0 }
 0xd58   : > { %2530 = vmatpush3.bf16.xpose.msra.mxu0 %v1436_v14 }
 0xd59   : > { %2535 = vmatprep.subr.bf16.mxu0 %v2827_v43 }
 0xd5a   : > { %v1529_v15 = vpop.permute.xlu0 %1528 }
 0xd5b   : > { %v1534_v16 = vsel %vm535_vm4, %v1529_v15, 0 }
 0xd5c   : > { %2542 = vmatpush3.bf16.xpose.msra.mxu1 %v1534_v16 }
 0xd5d   : > { %2553 = vmatprep.subr.bf16.mxu1 %v2827_v43 }
 0xd5f   : > { %2532 = vmatmul.mubr.msk.bf16.vlgmr.msra.gmra.mrb[20].mxu0 %vm535_vm4, %v3200_v9 }
 0xd60   : > { %2536 = vmatpush3.bf16.xpose.msra.mxu0 %v1485_v18  ;;  %2537 = vmatprep.mubr.msk.bf16.mxu0 %vm2828_vm2, %v2827_v43 }
 0xd61   : > { %2547 = vmatprep.subr.bf16.mxu0 %v2827_v43 }
 0xd63   : > { %2544 = vmatmul.mubr.msk.bf16.vlgmr.msra.gmra.mrb[40].mxu1 %vm535_vm4, %v3206_v11 }
 0xd64   : > { %2555 = vmatprep.mubr.msk.bf16.mxu1 %vm2828_vm2, %v2827_v43 }
 0xd67   : > { %2538 = vmatmul.mubr.msk.bf16.vlgmr.msra.gmra.mrb[24].mxu0 %vm535_vm4, %v3198_v8 }
 0xd68   : > { %2549 = vmatprep.mubr.msk.bf16.mxu0 %vm2828_vm2, %v2827_v43 }
 0xdc5   : > { %v1423_v19 = vpop.f32.mrb[16].mxu0 }
 0xdc6   : > { %v2527_v20 = vpop.f32.mrb[17].mxu0  ;;  %v1576_v21 = vsel %vm729_vm5, %v1423_v19, -inf }
 0xdc7   : > { %1577 = vmax.xlane.f32.xlu1 %v1576_v21  ;;  %v1426_v22 = vpop.f32.mrb[18].mxu0 }
 0xdc8   : > { %v2528_v23 = vpop.f32.mrb[19].mxu0 }
 0xdd8   : > { %1624 = vrot.lane.b32.xlu1 %v1376_v4, %s2833_s6 }
 0xe32   : > { %v1472_v24 = vpop.f32.mrb[20].mxu0 }
 0xe33   : > { %v2533_v25 = vpop.f32.mrb[21].mxu0  ;;  %v1579_v26 = vsel %vm729_vm5, %v1472_v24, -inf }
 0xe34   : > { %1580 = vmax.xlane.f32.xlu0 %v1579_v26  ;;  %v1475_v27 = vpop.f32.mrb[22].mxu0  ;;  %v2696_v25 = vld [vmem:[%s3415_s2 + $0x70] sm:$0xff]   ;;  %v2697_v26 = vld [vmem:[%s3415_s2 + $0x78] sm:$0xff]  }
 0xe35   : > { %v2534_v28 = vpop.f32.mrb[23].mxu0 }
 0xe36   : > { %v1570_v29 = vpop.f32.mrb[40].mxu1 }
 0xe37   : > { %v2545_v30 = vpop.f32.mrb[41].mxu1  ;;  %v1585_v40 = vsel %vm729_vm5, %v1570_v29, -inf }
 0xe38   : > { %v1573_v31 = vpop.f32.mrb[42].mxu1 }
 0xe39   : > { %v2546_v32 = vpop.f32.mrb[43].mxu1 }
 0xe3a   : > { %v1521_v33 = vpop.f32.mrb[24].mxu0 }
 0xe3b   : > { %v2539_v34 = vpop.f32.mrb[25].mxu0  ;;  %v1582_v35 = vsel %vm729_vm5, %v1521_v33, -inf }
 0xe3c   : > { %1583 = vmax.xlane.f32.xlu0 %v1582_v35  ;;  %v1524_v36 = vpop.f32.mrb[26].mxu0 }
 0xe3d   : > { %v2540_v37 = vpop.f32.mrb[27].mxu0 }
 0xe40   : > { %1586 = vmax.xlane.f32.xlu0 %v1585_v40 }
 0xe54   : > { %v1578_v41 = vpop.xlane.xlu1 %1577 }
 0xe55   : > { %v1588_v44 = vsub.f32 %v1423_v19, %v1578_v41 }
 0xe57   : > { %v1592_v45 = vmul.f32 1.442695, %v1588_v44 }
 0xe58   : > { %v1625_v46 = vpop.permute.xlu1 %1624 }
 0xe59   : > { %2738 = vpow2.f32 %v1592_v45  ;;  %v1630_v47 = vand.u32 %v1625_v46, %v3047_v42 }
 0xe5b   : > { %2548 = vmatpush3.bf16.msra.mxu0 %v1630_v47 }
 0xe5c   : > { %2559 = vmatprep.subr.bf16.mxu0 %v2827_v43 }
 0xe63   : > { %v2739_v48 = vpop.eup %2738 }
 0xe64   : > { %v1600_v49 = vsel %vm729_vm5, %v2739_v48, 0.0 }
 0xe65   : > { %1601 = vadd.xlane.f32.xlu1 %v1600_v49 }
 0xe76   : > { %1720 = vrot.lane.b32.xlu1 %v3198_v8, %s2833_s6 }
 0xec1   : > { %v1581_v50 = vpop.xlane.xlu0 %1580 }
 0xec2   : > { %v1589_v51 = vsub.f32 %v1472_v24, %v1581_v50 }
 0xec4   : > { %v1594_v52 = vmul.f32 1.442695, %v1589_v51  ;;  %v2323_v51 = vld [vmem:[%s3416_s3 + $0x13] ss:$0 sm:$0xff] }
 0xec6   : > { %2740 = vpow2.f32 %v1594_v52 }
 0xec9   : > { %v1584_v53 = vpop.xlane.xlu0 %1583 }
 0xeca   : > { %v1590_v54 = vsub.f32 %v1521_v33, %v1584_v53 }
 0xecc   : > { %v1596_v55 = vmul.f32 1.442695, %v1590_v54 }
 0xecd   : > { %v1587_v56 = vpop.xlane.xlu0 %1586 }
 0xece   : > { %2742 = vpow2.f32 %v1596_v55  ;;  %v1591_v57 = vsub.f32 %v1570_v29, %v1587_v56 }
 0xed0   : > { %v2741_v58 = vpop.eup %2740  ;;  %v1598_v59 = vmul.f32 1.442695, %v1591_v57 }
 0xed1   : > { %v1603_v60 = vsel %vm729_vm5, %v2741_v58, 0.0 }
 0xed2   : > { %2744 = vpow2.f32 %v1598_v59  ;;  %1604 = vadd.xlane.f32.xlu0 %v1603_v60  ;;  %v2698_v60 = vld [vmem:[%s3414_s1 + $0x30] sm:$0xff]  }
 0xed8   : > { %v2743_v38 = vpop.eup %2742 }
 0xed9   : > { %v1606_v61 = vsel %vm729_vm5, %v2743_v38, 0.0 }
 0xeda   : > { %1607 = vadd.xlane.f32.xlu1 %v1606_v61 }
 0xedc   : > { %v2745_v62 = vpop.eup %2744 }
 0xedd   : > { %v1609_v63 = vsel %vm729_vm5, %v2745_v62, 0.0 }
 0xede   : > { %1610 = vadd.xlane.f32.xlu0 %v1609_v63 }
 0xeeb   : > { %1768 = vrot.lane.b32.xlu1 %v3206_v11, %s2833_s6 }
 0xef2   : > { %v1602_v0 = vpop.xlane.xlu1 %1601 }
 0xef3   : > { %2746 = vrcp.f32 %v1602_v0 }
 0xef4   : > { %1672 = vrot.lane.b32.xlu0 %v3200_v9, %s2833_s6  ;;  %s2768_s6 = scalar_lea.vmem %s2767_s30, 32 }
 0xef5   : > { %p2770_p1 = scmp.lt.s32.totalorder %s2768_s6, %s2762_s26 }
 0xef6   : > { %v1721_v3 = vpop.permute.xlu1 %1720 }
 0xef7   : > { %v1726_v5 = vand.u32 %v1721_v3, %v3047_v42  ;;  %p2771_p2 = por %p2770_p1, %p2769_p0 }
 0xef9   : > { %p2772_p3 = pnand %p2771_p2, %p2765_p13 }
 0xefd   : > { %v2747_v1 = vpop.eup %2746 }
 0xefe   : > { %v1616_v2 = vmul.f32 %v2747_v1, %v2739_v48 }
 0xf00   : > { %v1620_v4 = vpack.c.bf16 %v1616_v2, %v1616_v2 }
 0xf02   : > { %2550 = vmatmul.mubr.msk.bf16.vlgmr.msra.gmra.mrb[28].mxu0 %vm780_vm8, %v1620_v4 }
 0xf03   : > { %2560 = vmatpush3.bf16.msra.mxu0 %v1726_v5  ;;  %2561 = vmatprep.mubr.msk.bf16.mxu0 %vm2828_vm2, %v2827_v43  ;;  %v2324_v5 = vld [vmem:[%s3416_s3 + $0x11] ss:$0 sm:$0xff] }
 0xf04   : > { %2571 = vmatprep.subr.bf16.mxu0 %v2827_v43 }
 0xf5f   : > { %v1605_v7 = vpop.xlane.xlu0 %1604 }
 0xf60   : > { %2748 = vrcp.f32 %v1605_v7 }
 0xf67   : > { %v1608_v8 = vpop.xlane.xlu1 %1607 }
 0xf68   : > { %2750 = vrcp.f32 %v1608_v8  ;;  %v2325_v8 = vld [vmem:[%s3416_s3 + $0x12] ss:$0 sm:$0xff] }
 0xf6a   : > { %v2749_v9 = vpop.eup %2748 }
 0xf6b   : > { %v1611_v10 = vpop.xlane.xlu0 %1610  ;;  %v1617_v11 = vmul.f32 %v2749_v9, %v2741_v58  ;;  %v1769_v13 = vpop.permute.xlu1 %1768 }
 0xf6c   : > { %2752 = vrcp.f32 %v1611_v10  ;;  %v1774_v17 = vand.u32 %v1769_v13, %v3047_v42  ;;  %v2702_v13 = vld [vmem:[%s3415_s2 + $0xd0] sm:$0xff]  }
 0xf6d   : > { %v1621_v16 = vpack.c.bf16 %v1617_v11, %v1617_v11 }
 0xf6f   : > { %v1673_v6 = vpop.permute.xlu0 %1672 }
 0xf70   : > { %v1678_v12 = vand.u32 %v1673_v6, %v3047_v42  ;;  %v2700_v6 = vld [vmem:[%s3415_s2 + $0xc0] sm:$0xff]  }
 0xf72   : > { %v2751_v14 = vpop.eup %2750  ;;  %2554 = vmatpush3.bf16.msra.mxu1 %v1678_v12  ;;  %v2701_v12 = vld [vmem:[%s3415_s2 + $0xc8] sm:$0xff]  }
 0xf73   : > { %v1618_v15 = vmul.f32 %v2751_v14, %v2743_v38  ;;  %2565 = vmatprep.subr.bf16.mxu1 %v2827_v43  ;;  %v2703_v14 = vld [vmem:[%s3415_s2 + $0xd8] sm:$0xff]  }
 0xf75   : > { %2556 = vmatmul.mubr.msk.bf16.vlgmr.msra.gmra.mrb[44].mxu1 %vm780_vm8, %v1621_v16  ;;  %v1622_v18 = vpack.c.bf16 %v1618_v15, %v1618_v15  ;;  %v2704_v15 = vld [vmem:[%s3415_s2 + $0xe0] sm:$0xff]   ;;  %v2705_v16 = vld [vmem:[%s3415_s2 + $0xe8] sm:$0xff]  }
 0xf76   : > { %v2753_v19 = vpop.eup %2752  ;;  %2566 = vmatpush3.bf16.msra.mxu1 %v1774_v17  ;;  %2567 = vmatprep.mubr.msk.bf16.mxu1 %vm2828_vm2, %v2827_v43  ;;  %v2706_v17 = vld [vmem:[%s3415_s2 + $0xf0] sm:$0xff]  }
 0xf77   : > { %v1619_v20 = vmul.f32 %v2753_v19, %v2745_v62  ;;  %2562 = vmatmul.mubr.msk.bf16.vlgmr.msra.gmra.mrb[32].mxu0 %vm780_vm8, %v1622_v18  ;;  %2579 = vmatprep.subr.bf16.mxu1 %v2827_v43  ;;  %v2707_v18 = vld [vmem:[%s3415_s2 + $0xf8] sm:$0xff]   ;;  %v2327_v19 = vld [vmem:[%s3417_s4 + $0x3] ss:$0 sm:$0xff] }
 0xf78   : > { %2575 = vmatprep.mubr.msk.bf16.mxu0 %vm2828_vm2, %v2827_v43  ;;  %2572 = vmatpush3.bf16.msra.mxu0 %v2696_v25 }
 0xf79   : > { %v1623_v21 = vpack.c.bf16 %v1619_v20, %v1619_v20  ;;  %2573 = vmatprep.subr.bf16.mxu0 %v2827_v43 }
 0xf7c   : > { %2574 = vmatpush3.bf16.msra.mxu0 %v2697_v26 }
 0xf7d   : > { %2568 = vmatmul.mubr.msk.bf16.vlgmr.msra.gmra.mrb[48].mxu1 %vm780_vm8, %v1623_v21  ;;  %2587 = vmatprep.subr.bf16.mxu0 %v2827_v43 }
 0xf7e   : > { %2583 = vmatprep.mubr.msk.bf16.mxu1 %vm2828_vm2, %v2827_v43  ;;  %2580 = vmatpush3.bf16.msra.mxu1 %v2698_v60 }
 0xf7f   : > { %2581 = vmatprep.subr.bf16.mxu1 %v2827_v43 }
 0xfd5   : > { %v1666_v42 = vpop.f32.mrb[28].mxu0 }
 0xfd6   : > { %v2551_v22 = vpop.f32.mrb[29].mxu0 }
 0xfd7   : > { %v1669_v23 = vpop.f32.mrb[30].mxu0 }
 0xfd8   : > { %v2552_v24 = vpop.f32.mrb[31].mxu0 }
0x1048   : > { %v1714_v27 = vpop.f32.mrb[44].mxu1 }
0x1049   : > { %1817 = vrot.lane.b32.xlu1 %v1714_v27, %s2835_s11  ;;  %v2557_v28 = vpop.f32.mrb[45].mxu1 }
0x104a   : > { %v1717_v29 = vpop.f32.mrb[46].mxu1  ;;  %v1762_v30 = vpop.f32.mrb[32].mxu0 }
0x104b   : > { %v2563_v31 = vpop.f32.mrb[33].mxu0  ;;  %1821 = vrot.lane.b32.xlu0 %v1762_v30, %s2837_s13  ;;  %v2558_v32 = vpop.f32.mrb[47].mxu1 }
0x104c   : > { %v1765_v33 = vpop.f32.mrb[34].mxu0  ;;  %v2340_v32 = vld [vmem:[%s3416_s3 + $0x14] ss:$0 sm:$0xff] }
0x104d   : > { %v2564_v34 = vpop.f32.mrb[35].mxu0 }
0x1050   : > { %v1810_v35 = vpop.f32.mrb[48].mxu1 }
0x1051   : > { %1825 = vrot.lane.b32.xlu1 %v1810_v35, %s2836_s12  ;;  %v2569_v36 = vpop.f32.mrb[49].mxu1 }
0x1052   : > { %v1813_v37 = vpop.f32.mrb[50].mxu1 }
0x1053   : > { %v2570_v40 = vpop.f32.mrb[51].mxu1 }
0x10bb   : > { %v1818_v41 = vpop.permute.xlu1 %1817 }
0x10bc   : > { %v1828_v44 = vsel %vm535_vm4, %v1666_v42, %v1818_v41 }
0x10bd   : > { %v1822_v45 = vpop.permute.xlu0 %1821 }
0x10be   : > { %v1829_v46 = vsel %vm988_vm9, %v1828_v44, %v1822_v45  ;;  %v2708_v45 = vld [vmem:[%s3414_s1 + $0x40] sm:$0xff]  }
0x10c3   : > { %v1826_v47 = vpop.permute.xlu1 %1825 }
0x10c4   : > { %v1830_v48 = vsel %vm990_vm10, %v1829_v46, %v1826_v47  ;;  %v2709_v46 = vld [vmem:[%s3414_s1 + $0x48] sm:$0xff]  }
0x10c5   : > { %v1831_v49 = vpack.c.bf16 %v1830_v48, %v1830_v48 }
0x10c7   : > { %2576 = vmatmul.mubr.msk.bf16.vlgmr.msra.gmra.mrb[36].mxu0 %vm474_vm3, %v1831_v49 }
0x10c8   : > { %2603 = vmatprep.mubr.msk.bf16.mxu0 %vm2828_vm2, %v2827_v43  ;;  %2588 = vmatpush3.bf16.msra.mxu0 %v2700_v6 }
0x10c9   : > { %2589 = vmatprep.subr.bf16.mxu0 %v2827_v43 }
0x10cc   : > { %2590 = vmatpush3.bf16.msra.mxu0 %v2701_v12 }
0x10cd   : > { %2591 = vmatprep.subr.bf16.mxu0 %v2827_v43 }
0x10d0   : > { %2592 = vmatpush3.bf16.msra.mxu0 %v2702_v13 }
0x10d1   : > { %2593 = vmatprep.subr.bf16.mxu0 %v2827_v43 }
0x10d4   : > { %2594 = vmatpush3.bf16.msra.mxu0 %v2703_v14 }
0x10d5   : > { %2595 = vmatprep.subr.bf16.mxu0 %v2827_v43 }
0x10d8   : > { %2596 = vmatpush3.bf16.msra.mxu0 %v2704_v15 }
0x10d9   : > { %2597 = vmatprep.subr.bf16.mxu0 %v2827_v43 }
0x10dc   : > { %2598 = vmatpush3.bf16.msra.mxu0 %v2705_v16 }
0x10dd   : > { %2599 = vmatprep.subr.bf16.mxu0 %v2827_v43 }
0x10e0   : > { %2600 = vmatpush3.bf16.msra.mxu0 %v2706_v17 }
0x10e1   : > { %2601 = vmatprep.subr.bf16.mxu0 %v2827_v43 }
0x10e4   : > { %2602 = vmatpush3.bf16.msra.mxu0 %v2707_v18 }
0x119a   : > { %v1881_v50 = vpop.f32.mrb[36].mxu0 }
0x119b   : > { %v1887_v52 = vadd.f32 %v1881_v50, %v3166_v39  ;;  %v2577_v53 = vpop.f32.mrb[37].mxu0  ;;  %v2699_v39 = vld [vmem:[%s3414_s1 + $0x38] sm:$0xff]  }
0x119c   : > { %v1884_v54 = vpop.f32.mrb[38].mxu0  ;;  %2582 = vmatpush3.bf16.msra.mxu1 %v2699_v39 }
0x119d   : > { %v3289_v55 = vadd.f32 %v2323_v51, %v1887_v52  ;;  %v2578_v56 = vpop.f32.mrb[39].mxu0  ;;  %2607 = vmatprep.subr.bf16.mxu1 %v2827_v43 }
0x119e   : > { %v2086_v56 = vld [vmem:[%s3416_s3 + $0x7] sm:$0x1] }
0x119f   : > { %v1896_v57 = vsel %vm373_vm1, %v3289_v55, 0.0  ;;  %v1900_v58 = vmul.f32 %v3289_v55, %v3289_v55 }
0x11a0   : > { %1897 = vadd.xlane.f32.xlu0 %v1896_v57 }
0x11a1   : > { %v1901_v59 = vsel %vm373_vm1, %v1900_v58, 0.0 }
0x11a2   : > { %1902 = vadd.xlane.f32.xlu1 %v1901_v59 }
0x122d   : > { %v1898_v38 = vpop.xlane.xlu0 %1897 }
0x122e   : > { %v1899_v61 = vmul.f32 0.03125, %v1898_v38 }
0x122f   : > { %v1903_v62 = vpop.xlane.xlu1 %1902 }
0x1230   : > { %v1905_v63 = vmul.f32 %v1899_v61, %v1899_v61  ;;  %v1904_v0 = vmul.f32 0.03125, %v1903_v62  ;;  %v1907_v3 = vsub.f32 %v3289_v55, %v1899_v61 }
0x1232   : > { %v1906_v1 = vsub.f32 %v1904_v0, %v1905_v63 }
0x1234   : > { %v1908_v2 = vadd.f32 1e-05, %v1906_v1 }
0x1236   : > { %2754 = vrsqrt.f32 %v1908_v2 }
0x1240   : > { %v2755_v4 = vpop.eup %2754 }
0x1241   : > { %v1910_v7 = vmul.f32 %v2755_v4, %v1907_v3 }
0x1243   : > { %v1915_v10 = vmul.f32 %v2324_v5, %v1910_v7 }
0x1245   : > { %v1920_v9 = vadd.f32 %v2325_v8, %v1915_v10 }
0x1247   : > { %v1921_v11 = vpack.c.bf16 %v1920_v9, %v1920_v9 }
0x1249   : > { %2584 = vmatmul.mubr.msk.bf16.vlgmr.msra.gmra.mrb[52].mxu1 %vm474_vm3, %v1921_v11 }
0x124a   : > { %2611 = vmatprep.mubr.msk.bf16.mxu1 %vm2828_vm2, %v2827_v43  ;;  %2608 = vmatpush3.bf16.msra.mxu1 %v2708_v45 }
0x124b   : > { %2609 = vmatprep.subr.bf16.mxu1 %v2827_v43  ;;  %v2087_v43 = vld [vmem:[%s3416_s3 + $0x8] sm:$0x1] }
0x124e   : > { %2610 = vmatpush3.bf16.msra.mxu1 %v2709_v46 }
0x131c   : > { %v1976_v20 = vpop.f32.mrb[52].mxu1 }
0x131d   : > { %v1977_v21 = vadd.f32 %v2327_v19, %v1976_v20  ;;  %v2585_v42 = vpop.f32.mrb[53].mxu1 }
0x131e   : > { %v1979_v22 = vpop.f32.mrb[54].mxu1 }
0x131f   : > { %v2331_v23 = vmul.f32 -1.702, %v1977_v21  ;;  %v2586_v24 = vpop.f32.mrb[55].mxu1 }
0x1321   : > { %v1984_v25 = vmul.f32 1.442695, %v2331_v23 }
0x1323   : > { %2756 = vpow2.f32 %v1984_v25 }
0x132d   : > { %v2757_v26 = vpop.eup %2756 }
0x132e   : > { %v1986_v27 = vadd.f32 1.0, %v2757_v26 }
0x1330   : > { %2758 = vrcp.f32 %v1986_v27 }
0x133a   : > { %v2759_v28 = vpop.eup %2758 }
0x133b   : > { %v1989_v29 = vmul.f32 %v2759_v28, %v1977_v21 }
0x133d   : > { %v1990_v30 = vpack.c.bf16 %v1989_v29, %v1989_v29 }
0x133f   : > { %2604 = vmatmul.mubr.bf16.vlgmr.msra.gmra.mrb[40].mxu0 %v1990_v30 }
0x1412   : > { %v2073_v31 = vpop.f32.mrb[40].mxu0 }
0x1413   : > { %v2079_v33 = vadd.f32 %v2073_v31, %v3289_v55  ;;  %v2605_v34 = vpop.f32.mrb[41].mxu0 }
0x1414   : > { %v2076_v35 = vpop.f32.mrb[42].mxu0 }
0x1415   : > { %v2085_v36 = vadd.f32 %v2340_v32, %v2079_v33  ;;  %v2606_v37 = vpop.f32.mrb[43].mxu0 }
0x1417   : > { %v2089_v40 = vsel %vm2088_vm11, %v2085_v36, 0.0  ;;  %v2093_v41 = vmul.f32 %v2085_v36, %v2085_v36 }
0x1418   : > { %2090 = vadd.xlane.f32.xlu0 %v2089_v40 }
0x1419   : > { %v2094_v44 = vsel %vm2088_vm11, %v2093_v41, 0.0 }
0x141c   : > { %2095 = vadd.xlane.f32.xlu0 %v2094_v44 }
0x14a5   : > { %v2091_v47 = vpop.xlane.xlu0 %2090 }
0x14a6   : > { %v2092_v48 = vmul.f32 0.03125, %v2091_v47 }
0x14a8   : > { %v2098_v50 = vmul.f32 %v2092_v48, %v2092_v48  ;;  %v2100_v54 = vsub.f32 %v2085_v36, %v2092_v48 }
0x14a9   : > { %v2096_v49 = vpop.xlane.xlu0 %2095 }
0x14aa   : > { %v2097_v51 = vmul.f32 0.03125, %v2096_v49 }
0x14ac   : > { %v2099_v52 = vsub.f32 %v2097_v51, %v2098_v50 }
0x14ae   : > { %v2101_v53 = vadd.f32 1e-05, %v2099_v52 }
0x14b0   : > { %2760 = vrsqrt.f32 %v2101_v53 }
0x14ba   : > { %v2761_v55 = vpop.eup %2760 }
0x14bb   : > { %v2103_v57 = vmul.f32 %v2761_v55, %v2100_v54 }
0x14bd   : > { %v2104_v58 = vmul.f32 %v2103_v57, %v2086_v56 }
0x14bf   : > { %v2105_v59 = vadd.f32 %v2104_v58, %v2087_v43 }
0x14c1   : > { %v2106_v60 = vpack.c.bf16 %v2105_v59, %v2105_v59 }
0x14c3   : > { %2612 = vmatmul.mubr.msk.bf16.vlgmr.msra.gmra.mrb[56].mxu1 %vm474_vm3, %v2106_v60 }
0x1596   : > { %v2161_v39 = vpop.f32.mrb[56].mxu1 }
0x1597   : > { %2167 = vst [vmem:[%s216_s17] sm:$0x1] %v2161_v39  ;;  %v2613_v38 = vpop.f32.mrb[57].mxu1 }
0x1598   : > { %v2164_v61 = vpop.f32.mrb[58].mxu1 }
0x1599   : > { %2775 = shalt.err (!%p2772_p3)
}
0x159a   : > { %s2776_s11 = scalar_lea.hbm %s3373_s23, 16  ;;  %s2780_s14 = scalar_lea.hbm %s3418_s5, 32 }
0x159b   : > { %p2777_p4 = scmp.ne.s32.totalorder %s3373_s23, %s2776_s11  ;;  %p2781_p9 = scmp.lt.u32.totalorder %s3373_s23, %s3418_s5 }
0x159c   : > { %p2782_p10 = scmp.lt.u32.totalorder %s2780_s14, %s2776_s11  ;;  %p2784_p12 = scmp.lt.u32.totalorder %s2776_s11, %s3373_s23 }
0x159d   : > { %p2778_p7 = pnand %p2777_p4, %p2907_p5 }
0x159e   : > { %p2783_p11 = por %p2782_p10, %p2781_p9 }
0x159f   : > { %p2779_p8 = pneg %p2778_p7 }
0x15a0   : > { %p2785_p13 = por %p2784_p12, %p2783_p11 }
0x15a2   : > { %p2786_p0 = pnand %p2785_p13, %p2779_p8 }
0x15a4   : > { %2789 = shalt.err (!%p2786_p0)
}
0x15a5   : > { %2615 = dma.vmem_to_hbm [thread:$0]  (%p2907_p5), %s3368_s7, 16, %s3373_s23, %s2169_s25   ;;  %v2614_v62 = vpop.f32.mrb[59].mxu1 }
0x15a6 PF: > { %p2621_p1 = scmp.ge.s32.totalorder %s2824_s21, 2  ;;  %s2193_s17 = sand.u32 1, %s2812_s18  }
0x15a7   : > { %s2194_s8 = scalar_lea.sflag [#allocation3], %s2193_s17 }
0x15a8   : > { %p2618_p2 = pnand %p2621_p1, %p2911_p6 }
0x15aa   : > { %2807 = dma.done.wait (!%p2618_p2), %s2194_s8, 16  }
0x15ab   : > { %2809 = vsyncadd (!%p2618_p2), %s2194_s8, 4294967280  ;;  %p15_p3 = scmp.ge.s32.totalorder %s2894_s24, 4   ;;  %s3421_s18 = smov %s2816_s19 }
0x15ac   : > { %s3422_s19 = smov %s2820_s20  ;;  %s3423_s20 = smov %s2905_s27 }
0x15ad   : > { %s3424_s21 = smov %s2894_s24  ;;  %17 = sbr.rel (!%p15_p3) target bundleno = 3 (0x3), region = 80 }
0x15b4   :  { %2198 = vsyncpa [#allocation3], 1 }
0x15b5   :  { %2200 = vsyncpa [#allocation3 + $0x1], 1 }

</bundles_post_ra>
